<compile_context>
chip_gen: v7x
topology: tpu7x:2x2x1
jax: 0.10.0
libtpu: 0.0.40
codegen_flags: <defaults>
</compile_context>

<pallas_src>
import functools

import jax
import jax.numpy as jnp
import numpy as np
from jax.experimental import pallas as pl
from jax.experimental.pallas import tpu as pltpu


# ------------------------------ fused kernel -------------------------------

def _bottleneck_kernel(x_ref, w1_ref, b1_ref, w2_ref, b2_ref, w3_ref, b3_ref,
                       out_ref, pad_ref):
    """One grid step = one (image, row-tile).

    x_ref   : (1, H, W, Cin)   f32  whole image (resident across the row-tile axis)
    w1_ref  : (Cin, Cw)        cd   conv1 1x1 weight, BN1 scale folded in
    b1_ref  : (1, Cw)          f32  BN1 shift
    w2_ref  : (3, 3*Cw, Cw)    cd   conv2 3x3 weight (ky, (kx, ci), co), BN2 folded
    b2_ref  : (1, Cw)          f32  BN2 shift
    w3_ref  : (Cw, Cout)       cd   conv3 1x1 weight, BN3 scale folded in
    b3_ref  : (1, Cout)        f32  BN3 shift
    out_ref : (1, TH, W, Cout)      output row-tile
    pad_ref : (TH+2, W+2, Cw)  cd   conv1-output halo tile (VMEM scratch)
    """
    _, H, W, Cin = x_ref.shape
    Cw = w1_ref.shape[-1]
    Cout = w3_ref.shape[-1]
    TH = out_ref.shape[1]
    cd = w1_ref.dtype                                    # MXU input dtype

    hi = pl.program_id(1)
    n_ht = pl.num_programs(1)
    h0 = pl.multiple_of(hi * TH, TH)                     # first output row of this tile

    def conv1(rows_f32):                                 # relu(rows @ w1 + shift1) in f32
        y = jnp.dot(rows_f32.astype(cd), w1_ref[...],
                    preferred_element_type=jnp.float32)
        return jnp.maximum(y + b1_ref[...], 0.0)

    # ---- conv1 (1x1) + BN1 + ReLU on this tile's TH rows ----
    x_core = x_ref[:, pl.ds(h0, TH), :, :].reshape(TH * W, Cin)   # f32, reused as identity
    y1 = conv1(x_core)                                            # (TH*W, Cw) f32
    pad_ref[1:TH + 1, 1:W + 1, :] = y1.reshape(TH, W, Cw).astype(cd)

    # ---- 2 halo rows: recompute conv1 on the neighbour rows, zero at image edge ----
    top = x_ref[:, pl.ds(jnp.maximum(h0 - 1, 0), 1), :, :].reshape(W, Cin)
    y_top = conv1(top) * (hi > 0).astype(jnp.float32)
    pad_ref[0:1, 1:W + 1, :] = y_top.reshape(1, W, Cw).astype(cd)

    bot = x_ref[:, pl.ds(jnp.minimum(h0 + TH, H - 1), 1), :, :].reshape(W, Cin)
    y_bot = conv1(bot) * (hi < n_ht - 1).astype(jnp.float32)
    pad_ref[TH + 1:TH + 2, 1:W + 1, :] = y_bot.reshape(1, W, Cw).astype(cd)

    # ---- zero only the 1-pixel left/right border columns (interior fully rewritten) ----
    zcol = jnp.zeros((TH + 2, 1, Cw), cd)
    pad_ref[:, 0:1, :] = zcol
    pad_ref[:, W + 1:W + 2, :] = zcol

    # ---- conv2 (3x3, stride 1, pad 1) + BN2 + ReLU ----
    # im2col over the kx taps: 3 MXU matmuls with K = 3*Cw instead of 9 with K = Cw.
    pad = pad_ref[...]
    cols = jnp.concatenate(
        [pad[:, 0:W, :], pad[:, 1:W + 1, :], pad[:, 2:W + 2, :]], axis=-1)  # (TH+2, W, 3Cw)
    acc = jnp.zeros((TH * W, Cw), jnp.float32)
    for dy in range(3):                                   # static unroll, outer-dim slices
        patch = cols[dy:dy + TH].reshape(TH * W, 3 * Cw)
        acc = acc + jnp.dot(patch, w2_ref[dy], preferred_element_type=jnp.float32)
    y2 = jnp.maximum(acc + b2_ref[...], 0.0)

    # ---- conv3 (1x1) + BN3 + identity (f32) + ReLU ----
    y3 = jnp.dot(y2.astype(cd), w3_ref[...], preferred_element_type=jnp.float32)
    y3 = y3 + b3_ref[...] + x_core                        # residual stays f32
    out_ref[...] = jnp.maximum(y3, 0.0).reshape(1, TH, W, Cout).astype(out_ref.dtype)


def _bottleneck_pallas(x_nhwc, kp, *, compute_dtype, out_dtype, h_tile):
    N, H, W, Cin = x_nhwc.shape
    Cw = kp["w1"].shape[-1]
    Cout = kp["w3"].shape[-1]
    if Cin != Cout:
        # TODO(synk): downsample path (conv1x1 + BN on the identity) not implemented.
        raise ValueError("no-downsample Bottleneck requires inplanes == planes*4")
    TH = H if h_tile is None else int(h_tile)
    if H % TH != 0:
        raise ValueError("h_tile must divide H")

    cd = compute_dtype
    x_f32 = x_nhwc.astype(jnp.float32)                    # identity branch stays f32
    w1 = kp["w1"].astype(cd)
    w2 = kp["w2"].astype(cd)                              # (3, 3*Cw, Cw)
    w3 = kp["w3"].astype(cd)

    # VMEM budget from the actual block shapes (+ headroom) instead of a fixed cap;
    # floor at the 32 MiB scoped default, cap below physical VMEM.
    bpe = lambda dt: jnp.dtype(dt).itemsize
    x_blk = H * W * Cin * 4
    o_blk = TH * W * Cout * bpe(out_dtype)
    w_blk = (Cin * Cw + 9 * Cw * Cw + Cw * Cout) * bpe(cd) + (2 * Cw + Cout) * 4
    scr = (TH + 2) * (W + 2) * Cw * bpe(cd)
    tmp = TH * W * (3 * Cw + 2 * Cw + Cin + 2 * Cout) * 4          # rough f32 temporaries
    need = 2 * (x_blk + o_blk + w_blk) + scr + tmp
    vmem_limit = int(min(max(2 * need, 32 * 1024 * 1024), 96 * 1024 * 1024))

    grid_spec = pltpu.PrefetchScalarGridSpec(
        num_scalar_prefetch=0,
        grid=(N, H // TH),
        in_specs=[
            pl.BlockSpec((1, H, W, Cin), lambda n, h: (n, 0, 0, 0)),   # x (whole image)
            pl.BlockSpec((Cin, Cw), lambda n, h: (0, 0)),              # w1  (BN1 folded)
            pl.BlockSpec((1, Cw), lambda n, h: (0, 0)),                # shift1
            pl.BlockSpec((3, 3 * Cw, Cw), lambda n, h: (0, 0, 0)),     # w2  (BN2 folded)
            pl.BlockSpec((1, Cw), lambda n, h: (0, 0)),                # shift2
            pl.BlockSpec((Cw, Cout), lambda n, h: (0, 0)),             # w3  (BN3 folded)
            pl.BlockSpec((1, Cout), lambda n, h: (0, 0)),              # shift3
        ],
        out_specs=pl.BlockSpec((1, TH, W, Cout), lambda n, h: (n, h, 0, 0)),
        scratch_shapes=[pltpu.VMEM((TH + 2, W + 2, Cw), cd)],
    )

    return pl.pallas_call(
        _bottleneck_kernel,
        out_shape=jax.ShapeDtypeStruct((N, H, W, Cout), out_dtype),
        grid_spec=grid_spec,
        compiler_params=pltpu.CompilerParams(
            dimension_semantics=("parallel", "parallel"),  # batch x row-tiles -> megacore
            vmem_limit_bytes=vmem_limit,
        ),
    )(x_f32, w1, kp["shift1"], w2, kp["shift2"], w3, kp["shift3"])


@functools.partial(jax.jit, static_argnames=("compute_dtype", "out_dtype", "h_tile"))
def bottleneck_forward_nhwc(x_nhwc, kernel_params, compute_dtype=jnp.float32,
                            out_dtype=jnp.float32, h_tile=None):
    """Preferred entry point: keep the surrounding model NHWC end-to-end."""
    return _bottleneck_pallas(x_nhwc, kernel_params, compute_dtype=compute_dtype,
                              out_dtype=out_dtype, h_tile=h_tile)


@functools.partial(jax.jit, static_argnames=("compute_dtype", "out_dtype", "h_tile"))
def bottleneck_forward(x_nchw, kernel_params, compute_dtype=jnp.float32,
                       out_dtype=jnp.float32, h_tile=None):
    """Bottleneck.forward with the module's NCHW boundary (transposes only here)."""
    x = jnp.transpose(x_nchw, (0, 2, 3, 1))               # NCHW -> NHWC
    out = _bottleneck_pallas(x, kernel_params, compute_dtype=compute_dtype,
                             out_dtype=out_dtype, h_tile=h_tile)
    return jnp.transpose(out, (0, 3, 1, 2))                # NHWC -> NCHW


# ------------------------------- parameters --------------------------------

def make_bottleneck_params(key, inplanes, planes, base_width=64, groups=1, eps=1e-5):
    """Synthetic params matching nn.Conv2d / nn.BatchNorm2d shapes (BN in scale/shift form)."""
    expansion = 4
    width = int(planes * (base_width / 64.0)) * groups
    cout = planes * expansion
    assert inplanes == cout, "no-downsample Bottleneck requires inplanes == planes*4"

    ks = jax.random.split(key, 15)
    w1 = jax.random.normal(ks[0], (inplanes, width), jnp.float32) * 0.1     # 1x1 (IO)
    w2 = jax.random.normal(ks[1], (3, 3, width, width), jnp.float32) * 0.1  # 3x3 (HWIO)
    w3 = jax.random.normal(ks[2], (width, cout), jnp.float32) * 0.1         # 1x1 (IO)

    def bn(kg, kb, km, kv, c):
        g = 1.0 + 0.1 * jax.random.normal(kg, (c,), jnp.float32)
        b = 0.1 * jax.random.normal(kb, (c,), jnp.float32)
        m = 0.1 * jax.random.normal(km, (c,), jnp.float32)
        v = jnp.abs(jax.random.normal(kv, (c,), jnp.float32)) + 0.5
        scale = g / jnp.sqrt(v + eps)
        shift = b - m * scale
        return scale.reshape(1, c), shift.reshape(1, c)

    s1, b1 = bn(ks[3], ks[4], ks[5], ks[6], width)
    s2, b2 = bn(ks[7], ks[8], ks[9], ks[10], width)
    s3, b3 = bn(ks[11], ks[12], ks[13], ks[14], cout)
    return dict(w1=w1, w2=w2, w3=w3, scale1=s1, shift1=b1,
                scale2=s2, shift2=b2, scale3=s3, shift3=b3)


def fold_bn_into_conv(p):
    """Fold BN scales into the conv weights; reshape conv2 weight for the im2col kernel."""
    Cw = p["w1"].shape[-1]
    w1 = p["w1"] * p["scale1"]                   # (Cin, Cw) * (1, Cw)
    w2 = p["w2"] * p["scale2"][0]                # (3, 3, Cw, Cw) * (Cw,) on output channels
    w3 = p["w3"] * p["scale3"]                   # (Cw, Cout) * (1, Cout)
    return dict(w1=w1, w2=w2.reshape(3, 3 * Cw, Cw), w3=w3,
                shift1=p["shift1"], shift2=p["shift2"], shift3=p["shift3"])


# ------------------------------- reference ---------------------------------

def bottleneck_reference(x_nchw, p):
    """Pure-JAX (XLA conv) reference using the un-folded params."""
    hp = jax.lax.Precision.HIGHEST
    x = jnp.transpose(x_nchw, (0, 2, 3, 1))
    o1 = jnp.einsum("nhwc,cd->nhwd", x, p["w1"], precision=hp)
    o1 = jnp.maximum(o1 * p["scale1"][0] + p["shift1"][0], 0.0)
    dn = jax.lax.conv_dimension_numbers(o1.shape, p["w2"].shape,
                                        ("NHWC", "HWIO", "NHWC"))
    o2 = jax.lax.conv_general_dilated(o1, p["w2"], (1, 1), ((1, 1), (1, 1)),
                                      dimension_numbers=dn, precision=hp)
    o2 = jnp.maximum(o2 * p["scale2"][0] + p["shift2"][0], 0.0)
    o3 = jnp.einsum("nhwc,cd->nhwd", o2, p["w3"], precision=hp)
    o3 = jnp.maximum(o3 * p["scale3"][0] + p["shift3"][0] + x, 0.0)
    return jnp.transpose(o3, (0, 3, 1, 2))


# ---------------------------------- main ------------------------------------

if __name__ == "__main__":
    key = jax.random.PRNGKey(0)
    kx, kp = jax.random.split(key)

    planes = 4
    inplanes = planes * 4            # 16: required for the identity path
    N, H, W = 2, 16, 16
    x = jax.random.normal(kx, (N, inplanes, H, W), jnp.float32)
    params = make_bottleneck_params(kp, inplanes=inplanes, planes=planes)
    kparams = fold_bn_into_conv(params)

    ref = jax.block_until_ready(bottleneck_reference(x, params))

    # f32 MXU path, whole image per grid step (exact-ish check)
    out = jax.block_until_ready(bottleneck_forward(x, kparams,
                                                   compute_dtype=jnp.float32))
    assert out.shape == (N, inplanes, H, W)
    np.testing.assert_allclose(np.asarray(out), np.asarray(ref),
                               rtol=5e-4, atol=5e-4)

    # f32, spatially tiled (2 row-tiles): exercises the halo-recompute path
    out_t = jax.block_until_ready(bottleneck_forward(x, kparams,
                                                     compute_dtype=jnp.float32,
                                                     h_tile=8))
    np.testing.assert_allclose(np.asarray(out_t), np.asarray(ref),
                               rtol=5e-4, atol=5e-4)

    # bf16 MXU path (v6e/v7x perf mode): bf16 matmuls/scratch, f32 accumulate + residual
    out_bf = jax.block_until_ready(bottleneck_forward(x, kparams,
                                                      compute_dtype=jnp.bfloat16,
                                                      h_tile=8))
    np.testing.assert_allclose(np.asarray(out_bf), np.asarray(ref),
                               rtol=5e-2, atol=8e-2)

    # bf16 output as well (halves HBM writeback when the consumer accepts bf16)
    out_bfo = jax.block_until_ready(bottleneck_forward(x, kparams,
                                                       compute_dtype=jnp.bfloat16,
                                                       out_dtype=jnp.bfloat16,
                                                       h_tile=8))
    np.testing.assert_allclose(np.asarray(out_bfo, dtype=np.float32), np.asarray(ref),
                               rtol=5e-2, atol=2e-1)

    print("KERNEL_OK")
</pallas_src>

<mosaic_0001>
module attributes {stable_mosaic.version = 11 : i64} {
  func.func @_bottleneck_kernel(%arg0: i32, %arg1: i32, %arg2: memref<1x16x16x16xf32, #tpu.memory_space<vmem>>, %arg3: memref<16x4xf32, #tpu.memory_space<vmem>>, %arg4: memref<1x4xf32, #tpu.memory_space<vmem>>, %arg5: memref<3x12x4xf32, #tpu.memory_space<vmem>>, %arg6: memref<1x4xf32, #tpu.memory_space<vmem>>, %arg7: memref<4x16xf32, #tpu.memory_space<vmem>>, %arg8: memref<1x16xf32, #tpu.memory_space<vmem>>, %arg9: memref<1x16x16x16xf32, #tpu.memory_space<vmem>>, %arg10: memref<18x18x4xf32, #tpu.memory_space<vmem>>) attributes {dimension_semantics = [#tpu.dimension_semantics<parallel>, #tpu.dimension_semantics<parallel>], iteration_bounds = array<i64: 2, 1>, scalar_prefetch = 0 : i64, scratch_operands = 1 : i64, tpu.core_type = #tpu.core_type<tc>, window_params = [{transform_indices = @transform_0, window_bounds = array<i64: 1, 16, 16, 16>}, {pipeline_mode = #tpu.pipeline_mode<synchronous>, transform_indices = @transform_1, window_bounds = array<i64: 16, 4>}, {pipeline_mode = #tpu.pipeline_mode<synchronous>, transform_indices = @transform_2, window_bounds = array<i64: 1, 4>}, {pipeline_mode = #tpu.pipeline_mode<synchronous>, transform_indices = @transform_3, window_bounds = array<i64: 3, 12, 4>}, {pipeline_mode = #tpu.pipeline_mode<synchronous>, transform_indices = @transform_4, window_bounds = array<i64: 1, 4>}, {pipeline_mode = #tpu.pipeline_mode<synchronous>, transform_indices = @transform_5, window_bounds = array<i64: 4, 16>}, {pipeline_mode = #tpu.pipeline_mode<synchronous>, transform_indices = @transform_6, window_bounds = array<i64: 1, 16>}, {transform_indices = @transform_7, window_bounds = array<i64: 1, 16, 16, 16>}]} {
    %c16_i32 = arith.constant 16 : i32
    %0 = arith.muli %arg1, %c16_i32 : i32
    %1 = tpu.assume_multiple %0, 16 : i32
    %c0 = arith.constant 0 : index
    %2 = arith.index_cast %1 : i32 to index
    %c0_0 = arith.constant 0 : index
    %c0_1 = arith.constant 0 : index
    %3 = vector.load %arg2[%c0, %2, %c0_0, %c0_1] : memref<1x16x16x16xf32, #tpu.memory_space<vmem>>, vector<1x16x16x16xf32>
    %4 = vector.shape_cast %3 : vector<1x16x16x16xf32> to vector<256x16xf32>
    %c0_2 = arith.constant 0 : index
    %c0_3 = arith.constant 0 : index
    %5 = vector.load %arg3[%c0_2, %c0_3] : memref<16x4xf32, #tpu.memory_space<vmem>>, vector<16x4xf32>
    %cst = arith.constant dense<0.000000e+00> : vector<256x4xf32>
    %6 = tpu.matmul %4, %5, %cst {dimension_numbers = #tpu.dot_dimension_numbers<[1], [0], [0], [1], [0, 0, 1, 1], [], []>} : vector<256x16xf32>, vector<16x4xf32>, vector<256x4xf32> -> vector<256x4xf32>
    %c0_4 = arith.constant 0 : index
    %c0_5 = arith.constant 0 : index
    %7 = vector.load %arg4[%c0_4, %c0_5] : memref<1x4xf32, #tpu.memory_space<vmem>>, vector<1x4xf32>
    %8 = vector.broadcast %7 : vector<1x4xf32> to vector<256x4xf32>
    %9 = arith.addf %6, %8 : vector<256x4xf32>
    %cst_6 = arith.constant 0.000000e+00 : f32
    %10 = vector.broadcast %cst_6 : f32 to vector<256x4xf32>
    %11 = arith.maximumf %9, %10 : vector<256x4xf32>
    %12 = vector.shape_cast %11 : vector<256x4xf32> to vector<16x16x4xf32>
    %c1 = arith.constant 1 : index
    %c1_7 = arith.constant 1 : index
    %c0_8 = arith.constant 0 : index
    %13 = vector.load %arg10[%c1, %c1_7, %c0_8] : memref<18x18x4xf32, #tpu.memory_space<vmem>>, vector<16x16x4xf32>
    tpu.vector_store %arg10[%c1, %c1_7, %c0_8], %12 {strides = array<i32>} : memref<18x18x4xf32, #tpu.memory_space<vmem>>, vector<16x16x4xf32>,
    %c1_i32 = arith.constant 1 : i32
    %14 = arith.subi %1, %c1_i32 : i32
    %c0_i32 = arith.constant 0 : i32
    %15 = arith.maxsi %14, %c0_i32 : i32
    %c0_9 = arith.constant 0 : index
    %16 = arith.index_cast %15 : i32 to index
    %c0_10 = arith.constant 0 : index
    %c0_11 = arith.constant 0 : index
    %17 = vector.load %arg2[%c0_9, %16, %c0_10, %c0_11] : memref<1x16x16x16xf32, #tpu.memory_space<vmem>>, vector<1x1x16x16xf32>
    %18 = vector.shape_cast %17 : vector<1x1x16x16xf32> to vector<16x16xf32>
    %c0_12 = arith.constant 0 : index
    %c0_13 = arith.constant 0 : index
    %19 = vector.load %arg3[%c0_12, %c0_13] : memref<16x4xf32, #tpu.memory_space<vmem>>, vector<16x4xf32>
    %cst_14 = arith.constant dense<0.000000e+00> : vector<16x4xf32>
    %20 = tpu.matmul %18, %19, %cst_14 {dimension_numbers = #tpu.dot_dimension_numbers<[1], [0], [0], [1], [0, 0, 1, 1], [], []>} : vector<16x16xf32>, vector<16x4xf32>, vector<16x4xf32> -> vector<16x4xf32>
    %c0_15 = arith.constant 0 : index
    %c0_16 = arith.constant 0 : index
    %21 = vector.load %arg4[%c0_15, %c0_16] : memref<1x4xf32, #tpu.memory_space<vmem>>, vector<1x4xf32>
    %22 = vector.broadcast %21 : vector<1x4xf32> to vector<16x4xf32>
    %23 = arith.addf %20, %22 : vector<16x4xf32>
    %cst_17 = arith.constant 0.000000e+00 : f32
    %24 = vector.broadcast %cst_17 : f32 to vector<16x4xf32>
    %25 = arith.maximumf %23, %24 : vector<16x4xf32>
    %c0_i32_18 = arith.constant 0 : i32
    %26 = arith.cmpi sgt, %arg1, %c0_i32_18 : i32
    %27 = arith.extui %26 : i1 to i32
    %28 = arith.sitofp %27 : i32 to f32
    %29 = vector.broadcast %28 : f32 to vector<16x4xf32>
    %30 = arith.mulf %25, %29 : vector<16x4xf32>
    %31 = vector.shape_cast %30 : vector<16x4xf32> to vector<1x16x4xf32>
    %c0_19 = arith.constant 0 : index
    %c1_20 = arith.constant 1 : index
    %c0_21 = arith.constant 0 : index
    %32 = vector.load %arg10[%c0_19, %c1_20, %c0_21] : memref<18x18x4xf32, #tpu.memory_space<vmem>>, vector<1x16x4xf32>
    tpu.vector_store %arg10[%c0_19, %c1_20, %c0_21], %31 {strides = array<i32>} : memref<18x18x4xf32, #tpu.memory_space<vmem>>, vector<1x16x4xf32>,
    %c16_i32_22 = arith.constant 16 : i32
    %33 = arith.addi %1, %c16_i32_22 : i32
    %c15_i32 = arith.constant 15 : i32
    %34 = arith.minsi %33, %c15_i32 : i32
    %c0_23 = arith.constant 0 : index
    %35 = arith.index_cast %34 : i32 to index
    %c0_24 = arith.constant 0 : index
    %c0_25 = arith.constant 0 : index
    %36 = vector.load %arg2[%c0_23, %35, %c0_24, %c0_25] : memref<1x16x16x16xf32, #tpu.memory_space<vmem>>, vector<1x1x16x16xf32>
    %37 = vector.shape_cast %36 : vector<1x1x16x16xf32> to vector<16x16xf32>
    %c0_26 = arith.constant 0 : index
    %c0_27 = arith.constant 0 : index
    %38 = vector.load %arg3[%c0_26, %c0_27] : memref<16x4xf32, #tpu.memory_space<vmem>>, vector<16x4xf32>
    %cst_28 = arith.constant dense<0.000000e+00> : vector<16x4xf32>
    %39 = tpu.matmul %37, %38, %cst_28 {dimension_numbers = #tpu.dot_dimension_numbers<[1], [0], [0], [1], [0, 0, 1, 1], [], []>} : vector<16x16xf32>, vector<16x4xf32>, vector<16x4xf32> -> vector<16x4xf32>
    %c0_29 = arith.constant 0 : index
    %c0_30 = arith.constant 0 : index
    %40 = vector.load %arg4[%c0_29, %c0_30] : memref<1x4xf32, #tpu.memory_space<vmem>>, vector<1x4xf32>
    %41 = vector.broadcast %40 : vector<1x4xf32> to vector<16x4xf32>
    %42 = arith.addf %39, %41 : vector<16x4xf32>
    %cst_31 = arith.constant 0.000000e+00 : f32
    %43 = vector.broadcast %cst_31 : f32 to vector<16x4xf32>
    %44 = arith.maximumf %42, %43 : vector<16x4xf32>
    %c0_i32_32 = arith.constant 0 : i32
    %45 = arith.cmpi slt, %arg1, %c0_i32_32 : i32
    %46 = arith.extui %45 : i1 to i32
    %47 = arith.sitofp %46 : i32 to f32
    %48 = vector.broadcast %47 : f32 to vector<16x4xf32>
    %49 = arith.mulf %44, %48 : vector<16x4xf32>
    %50 = vector.shape_cast %49 : vector<16x4xf32> to vector<1x16x4xf32>
    %c17 = arith.constant 17 : index
    %c1_33 = arith.constant 1 : index
    %c0_34 = arith.constant 0 : index
    %51 = vector.load %arg10[%c17, %c1_33, %c0_34] : memref<18x18x4xf32, #tpu.memory_space<vmem>>, vector<1x16x4xf32>
    tpu.vector_store %arg10[%c17, %c1_33, %c0_34], %50 {strides = array<i32>} : memref<18x18x4xf32, #tpu.memory_space<vmem>>, vector<1x16x4xf32>,
    %cst_35 = arith.constant 0.000000e+00 : f32
    %52 = vector.broadcast %cst_35 : f32 to vector<18x1x4xf32>
    %c0_36 = arith.constant 0 : index
    %c0_37 = arith.constant 0 : index
    %c0_38 = arith.constant 0 : index
    %53 = vector.load %arg10[%c0_36, %c0_37, %c0_38] : memref<18x18x4xf32, #tpu.memory_space<vmem>>, vector<18x1x4xf32>
    tpu.vector_store %arg10[%c0_36, %c0_37, %c0_38], %52 {strides = array<i32>} : memref<18x18x4xf32, #tpu.memory_space<vmem>>, vector<18x1x4xf32>,
    %c0_39 = arith.constant 0 : index
    %c17_40 = arith.constant 17 : index
    %c0_41 = arith.constant 0 : index
    %54 = vector.load %arg10[%c0_39, %c17_40, %c0_41] : memref<18x18x4xf32, #tpu.memory_space<vmem>>, vector<18x1x4xf32>
    tpu.vector_store %arg10[%c0_39, %c17_40, %c0_41], %52 {strides = array<i32>} : memref<18x18x4xf32, #tpu.memory_space<vmem>>, vector<18x1x4xf32>,
    %c0_42 = arith.constant 0 : index
    %c0_43 = arith.constant 0 : index
    %c0_44 = arith.constant 0 : index
    %55 = vector.load %arg10[%c0_42, %c0_43, %c0_44] : memref<18x18x4xf32, #tpu.memory_space<vmem>>, vector<18x18x4xf32>
    %56 = vector.extract_strided_slice %55 {offsets = [0, 0, 0], sizes = [18, 16, 4], strides = [1, 1, 1]} : vector<18x18x4xf32> to vector<18x16x4xf32>
    %57 = vector.extract_strided_slice %55 {offsets = [0, 1, 0], sizes = [18, 16, 4], strides = [1, 1, 1]} : vector<18x18x4xf32> to vector<18x16x4xf32>
    %58 = vector.extract_strided_slice %55 {offsets = [0, 2, 0], sizes = [18, 16, 4], strides = [1, 1, 1]} : vector<18x18x4xf32> to vector<18x16x4xf32>
    %59 = tpu.concatenate %56, %57, %58 in 2 : vector<18x16x4xf32>, vector<18x16x4xf32>, vector<18x16x4xf32> -> vector<18x16x12xf32>
    %cst_45 = arith.constant 0.000000e+00 : f32
    %60 = vector.broadcast %cst_45 : f32 to vector<256x4xf32>
    %61 = vector.extract_strided_slice %59 {offsets = [0, 0, 0], sizes = [16, 16, 12], strides = [1, 1, 1]} : vector<18x16x12xf32> to vector<16x16x12xf32>
    %62 = vector.shape_cast %61 : vector<16x16x12xf32> to vector<256x12xf32>
    %c0_46 = arith.constant 0 : index
    %c0_47 = arith.constant 0 : index
    %c0_48 = arith.constant 0 : index
    %63 = vector.load %arg5[%c0_46, %c0_47, %c0_48] : memref<3x12x4xf32, #tpu.memory_space<vmem>>, vector<1x12x4xf32>
    %64 = vector.shape_cast %63 : vector<1x12x4xf32> to vector<12x4xf32>
    %cst_49 = arith.constant dense<0.000000e+00> : vector<256x4xf32>
    %65 = tpu.matmul %62, %64, %cst_49 {dimension_numbers = #tpu.dot_dimension_numbers<[1], [0], [0], [1], [0, 0, 1, 1], [], []>} : vector<256x12xf32>, vector<12x4xf32>, vector<256x4xf32> -> vector<256x4xf32>
    %66 = arith.addf %60, %65 : vector<256x4xf32>
    %67 = vector.extract_strided_slice %59 {offsets = [1, 0, 0], sizes = [16, 16, 12], strides = [1, 1, 1]} : vector<18x16x12xf32> to vector<16x16x12xf32>
    %68 = vector.shape_cast %67 : vector<16x16x12xf32> to vector<256x12xf32>
    %c1_50 = arith.constant 1 : index
    %c0_51 = arith.constant 0 : index
    %c0_52 = arith.constant 0 : index
    %69 = vector.load %arg5[%c1_50, %c0_51, %c0_52] : memref<3x12x4xf32, #tpu.memory_space<vmem>>, vector<1x12x4xf32>
    %70 = vector.shape_cast %69 : vector<1x12x4xf32> to vector<12x4xf32>
    %cst_53 = arith.constant dense<0.000000e+00> : vector<256x4xf32>
    %71 = tpu.matmul %68, %70, %cst_53 {dimension_numbers = #tpu.dot_dimension_numbers<[1], [0], [0], [1], [0, 0, 1, 1], [], []>} : vector<256x12xf32>, vector<12x4xf32>, vector<256x4xf32> -> vector<256x4xf32>
    %72 = arith.addf %66, %71 : vector<256x4xf32>
    %73 = vector.extract_strided_slice %59 {offsets = [2, 0, 0], sizes = [16, 16, 12], strides = [1, 1, 1]} : vector<18x16x12xf32> to vector<16x16x12xf32>
    %74 = vector.shape_cast %73 : vector<16x16x12xf32> to vector<256x12xf32>
    %c2 = arith.constant 2 : index
    %c0_54 = arith.constant 0 : index
    %c0_55 = arith.constant 0 : index
    %75 = vector.load %arg5[%c2, %c0_54, %c0_55] : memref<3x12x4xf32, #tpu.memory_space<vmem>>, vector<1x12x4xf32>
    %76 = vector.shape_cast %75 : vector<1x12x4xf32> to vector<12x4xf32>
    %cst_56 = arith.constant dense<0.000000e+00> : vector<256x4xf32>
    %77 = tpu.matmul %74, %76, %cst_56 {dimension_numbers = #tpu.dot_dimension_numbers<[1], [0], [0], [1], [0, 0, 1, 1], [], []>} : vector<256x12xf32>, vector<12x4xf32>, vector<256x4xf32> -> vector<256x4xf32>
    %78 = arith.addf %72, %77 : vector<256x4xf32>
    %c0_57 = arith.constant 0 : index
    %c0_58 = arith.constant 0 : index
    %79 = vector.load %arg6[%c0_57, %c0_58] : memref<1x4xf32, #tpu.memory_space<vmem>>, vector<1x4xf32>
    %80 = vector.broadcast %79 : vector<1x4xf32> to vector<256x4xf32>
    %81 = arith.addf %78, %80 : vector<256x4xf32>
    %cst_59 = arith.constant 0.000000e+00 : f32
    %82 = vector.broadcast %cst_59 : f32 to vector<256x4xf32>
    %83 = arith.maximumf %81, %82 : vector<256x4xf32>
    %c0_60 = arith.constant 0 : index
    %c0_61 = arith.constant 0 : index
    %84 = vector.load %arg7[%c0_60, %c0_61] : memref<4x16xf32, #tpu.memory_space<vmem>>, vector<4x16xf32>
    %cst_62 = arith.constant dense<0.000000e+00> : vector<256x16xf32>
    %85 = tpu.matmul %83, %84, %cst_62 {dimension_numbers = #tpu.dot_dimension_numbers<[1], [0], [0], [1], [0, 0, 1, 1], [], []>} : vector<256x4xf32>, vector<4x16xf32>, vector<256x16xf32> -> vector<256x16xf32>
    %c0_63 = arith.constant 0 : index
    %c0_64 = arith.constant 0 : index
    %86 = vector.load %arg8[%c0_63, %c0_64] : memref<1x16xf32, #tpu.memory_space<vmem>>, vector<1x16xf32>
    %87 = vector.broadcast %86 : vector<1x16xf32> to vector<256x16xf32>
    %88 = arith.addf %85, %87 : vector<256x16xf32>
    %89 = arith.addf %88, %4 : vector<256x16xf32>
    %cst_65 = arith.constant 0.000000e+00 : f32
    %90 = vector.broadcast %cst_65 : f32 to vector<256x16xf32>
    %91 = arith.maximumf %89, %90 : vector<256x16xf32>
    %92 = vector.shape_cast %91 : vector<256x16xf32> to vector<1x16x16x16xf32>
    %c0_66 = arith.constant 0 : index
    %c0_67 = arith.constant 0 : index
    %c0_68 = arith.constant 0 : index
    %c0_69 = arith.constant 0 : index
    %93 = vector.load %arg9[%c0_66, %c0_67, %c0_68, %c0_69] : memref<1x16x16x16xf32, #tpu.memory_space<vmem>>, vector<1x16x16x16xf32>
    tpu.vector_store %arg9[%c0_66, %c0_67, %c0_68, %c0_69], %92 {strides = array<i32>} : memref<1x16x16x16xf32, #tpu.memory_space<vmem>>, vector<1x16x16x16xf32>,
    return
  }
  func.func @transform_0(%arg0: i32, %arg1: i32) -> (i32, i32, i32, i32) {
    %c0_i32 = arith.constant 0 : i32
    %c0_i32_0 = arith.constant 0 : i32
    %c0_i32_1 = arith.constant 0 : i32
    %c0_i32_2 = arith.constant 0 : i32
    return %arg0, %c0_i32, %c0_i32_0, %c0_i32_1 : i32, i32, i32, i32
  }
  func.func @transform_1(%arg0: i32, %arg1: i32) -> (i32, i32) {
    %c0_i32 = arith.constant 0 : i32
    %c0_i32_0 = arith.constant 0 : i32
    %c0_i32_1 = arith.constant 0 : i32
    return %c0_i32, %c0_i32_0 : i32, i32
  }
  func.func @transform_2(%arg0: i32, %arg1: i32) -> (i32, i32) {
    %c0_i32 = arith.constant 0 : i32
    %c0_i32_0 = arith.constant 0 : i32
    %c0_i32_1 = arith.constant 0 : i32
    return %c0_i32, %c0_i32_0 : i32, i32
  }
  func.func @transform_3(%arg0: i32, %arg1: i32) -> (i32, i32, i32) {
    %c0_i32 = arith.constant 0 : i32
    %c0_i32_0 = arith.constant 0 : i32
    %c0_i32_1 = arith.constant 0 : i32
    %c0_i32_2 = arith.constant 0 : i32
    return %c0_i32, %c0_i32_0, %c0_i32_1 : i32, i32, i32
  }
  func.func @transform_4(%arg0: i32, %arg1: i32) -> (i32, i32) {
    %c0_i32 = arith.constant 0 : i32
    %c0_i32_0 = arith.constant 0 : i32
    %c0_i32_1 = arith.constant 0 : i32
    return %c0_i32, %c0_i32_0 : i32, i32
  }
  func.func @transform_5(%arg0: i32, %arg1: i32) -> (i32, i32) {
    %c0_i32 = arith.constant 0 : i32
    %c0_i32_0 = arith.constant 0 : i32
    %c0_i32_1 = arith.constant 0 : i32
    return %c0_i32, %c0_i32_0 : i32, i32
  }
  func.func @transform_6(%arg0: i32, %arg1: i32) -> (i32, i32) {
    %c0_i32 = arith.constant 0 : i32
    %c0_i32_0 = arith.constant 0 : i32
    %c0_i32_1 = arith.constant 0 : i32
    return %c0_i32, %c0_i32_0 : i32, i32
  }
  func.func @transform_7(%arg0: i32, %arg1: i32) -> (i32, i32, i32, i32) {
    %c0_i32 = arith.constant 0 : i32
    %c0_i32_0 = arith.constant 0 : i32
    %c0_i32_1 = arith.constant 0 : i32
    return %arg0, %arg1, %c0_i32, %c0_i32_0 : i32, i32, i32, i32
  }
}

</mosaic_0001>

<bundles_post_ra>
// kernel: bottleneck_forward.1
= control target key start
LH: loop header
LB: loop body
LE: loop exit
PB: predicated region body
PF: predicated region fallthrough
CT: control target
= control target key end

     0   :  { %s3858_s24 = smov 0   ;;  %s3860_s25 = smov 0   ;;  %s4988_s0 = inlined_call_operand.vmem [shape: f32[2,16,16,16], index: 0, kind: input, shape index: {}]   ;;  %s4989_s1 = inlined_call_operand.vmem [shape: f32[16,4], index: 1, kind: input, shape index: {}]   ;;  %s4990_s2 = inlined_call_operand.vmem [shape: f32[1,4], index: 2, kind: input, shape index: {}]   ;;  %s4991_s3 = inlined_call_operand.vmem [shape: f32[3,12,4], index: 3, kind: input, shape index: {}]   ;;  %s4992_s4 = inlined_call_operand.vmem [shape: f32[1,4], index: 4, kind: input, shape index: {}]   ;;  %s4993_s5 = inlined_call_operand.vmem [shape: f32[4,16], index: 5, kind: input, shape index: {}]   ;;  %s4994_s6 = inlined_call_operand.vmem [shape: f32[1,16], index: 6, kind: input, shape index: {}]   ;;  %s4995_s7 = inlined_call_operand.vmem [shape: f32[2,16,16,16], index: 7, kind: output, shape index: {}]  }
   0x1   :  { %s3862_s26 = smov 0  }
   0x2 LB: > { %s29_s27 = sadd.s32 1, %s3808_s25  ;;  %p2997_p0 = scmp.ge.s32.totalorder %s3812_s26, 1  ;;  %s3812_s26 = sphi %s3862_s26, %s17_s26   ;;  %s3808_s25 = sphi %s3860_s25, %s4999_s25   ;;  %s3804_s24 = sphi %s3858_s24, %s4998_s24  }
   0x3   : > { %p31_p1 = scmp.ge.s32.totalorder %s29_s27, 2  ;;  %p251_p2 = scmp.lt.s32.totalorder %s3812_s26, 3 }
   0x5   : > { %s5001_s27 = smov (%p31_p1, %s29_s27), 0  ;;  %p252_p3 = pnand %p2997_p0, %p251_p2 }
   0x6   : > { %v339_v0 = vld [vmem:[%s4989_s1] sm:$0xff] (!%p252_p3)  ;;  %v340_v1 = vld [vmem:[%s4989_s1 + $0x8] sm:$0xff] (!%p252_p3)  ;;  %p288_p4 = scmp.lt.s32.totalorder (!%p252_p3), %s3804_s24, 1  ;;  %vm348_vm0 = vcmask (!%p252_p3), 130048   ;;  %vm951_vm1 = vcmask (!%p252_p3), 24576   ;;  %v3814_v35 = vmov (!%p252_p3), 0.0  }
   0x7   : > { %255 = sbr.rel (%p252_p3) target bundleno = 1024 (0x400), region = 48  ;;  %v3634_v2 = vpack.c.bf16 (!%p252_p3), %v340_v1, %v339_v0  ;;  %971 = vst.msk [vmem:[#allocation2 + $0x29] sm:$0x1] (!%p252_p3), %vm951_vm1, %v3814_v35  ;;  %952 = vst.msk [vmem:[#allocation2] sm:$0x1] (!%p252_p3), %vm951_vm1, %v3814_v35  ;;  %vm703_vm2 = vcmask (!%p252_p3), 31744  }
   0x8   : > { %953 = vst.msk [vmem:[#allocation2 + $0x18] sm:$0x1] (!%p252_p3), %vm951_vm1, %v3814_v35  ;;  %954 = vst.msk [vmem:[#allocation2 + $0x30] sm:$0x1] (!%p252_p3), %vm951_vm1, %v3814_v35  ;;  %v3999_v36 = vld [vmem:[%s4990_s2] ss:$0 sm:$0xff] (!%p252_p3) }
   0x9   : > { %3635 = vmatprep.subr.bf16.mxu0 (!%p252_p3), %v3634_v2  ;;  %3639 = vmatprep.subr.bf16.mxu1 (!%p252_p3), %v3634_v2  ;;  %955 = vst.msk [vmem:[#allocation2 + $0x48] sm:$0x1] (!%p252_p3), %vm951_vm1, %v3814_v35  ;;  %956 = vst.msk [vmem:[#allocation2 + $0x60] sm:$0x1] (!%p252_p3), %vm951_vm1, %v3814_v35  ;;  %v3043_v50 = vld [vmem:[%s4991_s3 + $0x10] sm:$0xff] (!%p252_p3)  ;;  %vm1669_vm3 = vcmask (!%p252_p3), 1043456  }
   0xa   : > { %3637 = vmatpush3.bf16.msra.mxu0 (!%p252_p3), %v3634_v2  ;;  %3641 = vmatpush3.bf16.msra.mxu1 (!%p252_p3), %v3634_v2  ;;  %957 = vst.msk [vmem:[#allocation2 + $0x78] sm:$0x1] (!%p252_p3), %vm951_vm1, %v3814_v35  ;;  %958 = vst.msk [vmem:[#allocation2 + $0x90] sm:$0x1] (!%p252_p3), %vm951_vm1, %v3814_v35  ;;  %v3044_v51 = vld [vmem:[%s4991_s3 + $0x18] sm:$0xf] (!%p252_p3) }
   0xb   : > { %3643 = vmatprep.subr.bf16.mxu1 (!%p252_p3), %v3634_v2  ;;  %959 = vst.msk [vmem:[#allocation2 + $0xa8] sm:$0x1] (!%p252_p3), %vm951_vm1, %v3814_v35  ;;  %960 = vst.msk [vmem:[#allocation2 + $0xc0] sm:$0x1] (!%p252_p3), %vm951_vm1, %v3814_v35  ;;  %v3646_v55 = vpack.c.bf16 (!%p252_p3), %v3044_v51, %v3043_v50  ;;  %vm3815_vm4 = vmmov (!%p252_p3), 1   ;;  %vm1096_vm6 = vcmask (!%p252_p3), 1046528  }
   0xc   : > { %961 = vst.msk [vmem:[#allocation2 + $0xd8] sm:$0x1] (!%p252_p3), %vm951_vm1, %v3814_v35  ;;  %962 = vst.msk [vmem:[#allocation2 + $0xf0] sm:$0x1] (!%p252_p3), %vm951_vm1, %v3814_v35  ;;  %s3816_s19 = smov (!%p252_p3), 4   ;;  %vm1295_vm7 = vcmask (!%p252_p3), 1045504  }
   0xd   : > { %963 = vst.msk [vmem:[#allocation2 + $0x108] sm:$0x1] (!%p252_p3), %vm951_vm1, %v3814_v35  ;;  %964 = vst.msk [vmem:[#allocation2 + $0x120] sm:$0x1] (!%p252_p3), %vm951_vm1, %v3814_v35  ;;  %s3817_s20 = smov (!%p252_p3), 8   ;;  %vm1530_vm8 = vcmask (!%p252_p3), 64512  }
   0xe   : > { %s5003_s24 = smov (!%p288_p4, %s3804_s24), 1  ;;  %965 = vst.msk [vmem:[#allocation2 + $0x138] sm:$0x1] %vm951_vm1, %v3814_v35  ;;  %966 = vst.msk [vmem:[#allocation2 + $0x150] sm:$0x1] %vm951_vm1, %v3814_v35  ;;  %vm1572_vm9 = vcmask 97280  }
   0xf   : > { %s3183_s9 = sshll.u32 %s5003_s24, 8  ;;  %967 = vst.msk [vmem:[#allocation2 + $0x168] sm:$0x1] %vm951_vm1, %v3814_v35  ;;  %968 = vst.msk [vmem:[#allocation2 + $0x180] sm:$0x1] %vm951_vm1, %v3814_v35 }
  0x10   : > { %s3890_s12 = scalar_lea.vmem %s4988_s0, %s3183_s9  ;;  %969 = vst.msk [vmem:[#allocation2 + $0x198] sm:$0x1] %vm951_vm1, %v3814_v35  ;;  %970 = vst.msk [vmem:[#allocation2 + $0x11] sm:$0x1] %vm951_vm1, %v3814_v35 }
  0x11   : > { %v307_v3 = vld [vmem:[%s3890_s12] sm:$0xff]  ;;  %v308_v4 = vld [vmem:[%s3890_s12 + $0x8] sm:$0xff]  ;;  %v309_v5 = vld [vmem:[%s3890_s12 + $0x10] sm:$0xff]  ;;  %972 = vst.msk [vmem:[#allocation2 + $0x41] sm:$0x1] %vm951_vm1, %v3814_v35 }
  0x12   : > { %3366 = vmatprep.mubr.msk.f32.mxu0 %vm348_vm0, %v307_v3  ;;  %3418 = vmatprep.mubr.msk.f32.mxu1 %vm348_vm0, %v307_v3  ;;  %v310_v6 = vld [vmem:[%s3890_s12 + $0x18] sm:$0xff]  ;;  %v311_v7 = vld [vmem:[%s3890_s12 + $0x20] sm:$0xff]  ;;  %v312_v8 = vld [vmem:[%s3890_s12 + $0x28] sm:$0xff]  ;;  %973 = vst.msk [vmem:[#allocation2 + $0x59] sm:$0x1] %vm951_vm1, %v3814_v35 }
  0x13   : > { %3367 = vmatmul.mubr.msk.f32.vlgmr.msra.gmra.mrb[0].mxu0 %vm348_vm0, %v308_v4  ;;  %3419 = vmatmul.mubr.msk.f32.vlgmr.msra.gmra.mrb[0].mxu1 %vm348_vm0, %v308_v4  ;;  %v313_v9 = vld [vmem:[%s3890_s12 + $0x30] sm:$0xff]  ;;  %v314_v11 = vld [vmem:[%s3890_s12 + $0x38] sm:$0xff]  ;;  %v315_v13 = vld [vmem:[%s3890_s12 + $0x40] sm:$0xff]  ;;  %974 = vst.msk [vmem:[#allocation2 + $0x71] sm:$0x1] %vm951_vm1, %v3814_v35 }
  0x14   : > { %3369 = vmatprep.mubr.msk.f32.mxu0 %vm348_vm0, %v309_v5  ;;  %3645 = vmatpush3.bf16.msra.mxu1 %v3634_v2  ;;  %v337_v10 = vld [vmem:[%s3890_s12 + $0xf0] sm:$0xff]  ;;  %v338_v12 = vld [vmem:[%s3890_s12 + $0xf8] sm:$0xff]  ;;  %v316_v14 = vld [vmem:[%s3890_s12 + $0x48] sm:$0xff]  ;;  %975 = vst.msk [vmem:[#allocation2 + $0x89] sm:$0x1] %vm951_vm1, %v3814_v35 }
  0x15   : > { %3425 = vmatprep.mubr.msk.f32.mxu1 %vm348_vm0, %v337_v10  ;;  %v317_v15 = vld [vmem:[%s3890_s12 + $0x50] sm:$0xff]  ;;  %v318_v16 = vld [vmem:[%s3890_s12 + $0x58] sm:$0xff]  ;;  %v319_v17 = vld [vmem:[%s3890_s12 + $0x60] sm:$0xff]  ;;  %976 = vst.msk [vmem:[#allocation2 + $0xa1] sm:$0x1] %vm951_vm1, %v3814_v35 }
  0x16   : > { %v320_v18 = vld [vmem:[%s3890_s12 + $0x68] sm:$0xff]  ;;  %v321_v19 = vld [vmem:[%s3890_s12 + $0x70] sm:$0xff]  ;;  %v322_v20 = vld [vmem:[%s3890_s12 + $0x78] sm:$0xff]  ;;  %977 = vst.msk [vmem:[#allocation2 + $0xb9] sm:$0x1] %vm951_vm1, %v3814_v35 }
  0x17   : > { %3370 = vmatmul.mubr.msk.f32.gmra.mrb[2].mxu0 %vm348_vm0, %v310_v6  ;;  %3426 = vmatmul.mubr.msk.f32.vlgmr.msra.gmra.mrb[2].mxu1 %vm348_vm0, %v338_v12  ;;  %v323_v21 = vld [vmem:[%s3890_s12 + $0x80] sm:$0xff]  ;;  %v324_v22 = vld [vmem:[%s3890_s12 + $0x88] sm:$0xff]  ;;  %v325_v23 = vld [vmem:[%s3890_s12 + $0x90] sm:$0xff]  ;;  %978 = vst.msk [vmem:[#allocation2 + $0xd1] sm:$0x1] %vm951_vm1, %v3814_v35 }
  0x18   : > { %3372 = vmatprep.mubr.msk.f32.mxu0 %vm348_vm0, %v311_v7  ;;  %v326_v24 = vld [vmem:[%s3890_s12 + $0x98] sm:$0xff]  ;;  %v327_v25 = vld [vmem:[%s3890_s12 + $0xa0] sm:$0xff]  ;;  %v328_v26 = vld [vmem:[%s3890_s12 + $0xa8] sm:$0xff]  ;;  %979 = vst.msk [vmem:[#allocation2 + $0xe9] sm:$0x1] %vm951_vm1, %v3814_v35 }
  0x19   : > { %v329_v27 = vld [vmem:[%s3890_s12 + $0xb0] sm:$0xff]  ;;  %v330_v28 = vld [vmem:[%s3890_s12 + $0xb8] sm:$0xff]  ;;  %v331_v29 = vld [vmem:[%s3890_s12 + $0xc0] sm:$0xff]  ;;  %980 = vst.msk [vmem:[#allocation2 + $0x101] sm:$0x1] %vm951_vm1, %v3814_v35 }
  0x1a   : > { %v332_v30 = vld [vmem:[%s3890_s12 + $0xc8] sm:$0xff]  ;;  %v333_v31 = vld [vmem:[%s3890_s12 + $0xd0] sm:$0xff]  ;;  %v334_v32 = vld [vmem:[%s3890_s12 + $0xd8] sm:$0xff]  ;;  %981 = vst.msk [vmem:[#allocation2 + $0x119] sm:$0x1] %vm951_vm1, %v3814_v35 }
  0x1b   : > { %3373 = vmatmul.mubr.msk.f32.gmra.mrb[4].mxu0 %vm348_vm0, %v312_v8  ;;  %v335_v33 = vld [vmem:[%s3890_s12 + $0xe0] sm:$0xff]  ;;  %v336_v34 = vld [vmem:[%s3890_s12 + $0xe8] sm:$0xff]  ;;  %982 = vst.msk [vmem:[#allocation2 + $0x131] sm:$0x1] %vm951_vm1, %v3814_v35  ;;  %983 = vst.msk [vmem:[#allocation2 + $0x149] sm:$0x1] %vm951_vm1, %v3814_v35 }
  0x1c   : > { %3375 = vmatprep.mubr.msk.f32.mxu0 %vm348_vm0, %v313_v9  ;;  %984 = vst.msk [vmem:[#allocation2 + $0x161] sm:$0x1] %vm951_vm1, %v3814_v35  ;;  %985 = vst.msk [vmem:[#allocation2 + $0x179] sm:$0x1] %vm951_vm1, %v3814_v35 }
  0x1d   : > { %986 = vst.msk [vmem:[#allocation2 + $0x191] sm:$0x1] %vm951_vm1, %v3814_v35  ;;  %987 = vst.msk [vmem:[#allocation2 + $0x1a9] sm:$0x1] %vm951_vm1, %v3814_v35 }
  0x1e   : > { %vm4017_vm5 = vmpackc.low %vm1669_vm3, %vm3815_vm4 }
  0x1f   : > { %3376 = vmatmul.mubr.msk.f32.gmra.mrb[6].mxu0 %vm348_vm0, %v314_v11  ;;  %3648 = vmatprep.subr.msk.bf16.mxu0 %vm4017_vm5, %v3646_v55 }
  0x20   : > { %3378 = vmatprep.mubr.msk.f32.mxu0 %vm348_vm0, %v315_v13  ;;  %3664 = vmatprep.subr.msk.bf16.mxu1 %vm4017_vm5, %v3646_v55 }
  0x21   : > { %3651 = vmatpush3.bf16.msk.msra.mxu0 %vm4017_vm5, %v3646_v55  ;;  %3665 = vmatpush3.bf16.msk.msra.mxu1 %vm4017_vm5, %v3646_v55 }
  0x23   : > { %3379 = vmatmul.mubr.msk.f32.gmra.mrb[8].mxu0 %vm348_vm0, %v316_v14 }
  0x24   : > { %3381 = vmatprep.mubr.msk.f32.mxu0 %vm348_vm0, %v317_v15 }
  0x27   : > { %3382 = vmatmul.mubr.msk.f32.gmra.mrb[10].mxu0 %vm348_vm0, %v318_v16 }
  0x28   : > { %3384 = vmatprep.mubr.msk.f32.mxu0 %vm348_vm0, %v319_v17 }
  0x2b   : > { %3385 = vmatmul.mubr.msk.f32.gmra.mrb[12].mxu0 %vm348_vm0, %v320_v18 }
  0x2c   : > { %3387 = vmatprep.mubr.msk.f32.mxu0 %vm348_vm0, %v321_v19 }
  0x2f   : > { %3388 = vmatmul.mubr.msk.f32.gmra.mrb[14].mxu0 %vm348_vm0, %v322_v20 }
  0x30   : > { %3390 = vmatprep.mubr.msk.f32.mxu0 %vm348_vm0, %v323_v21 }
  0x33   : > { %3391 = vmatmul.mubr.msk.f32.gmra.mrb[16].mxu0 %vm348_vm0, %v324_v22 }
  0x34   : > { %3393 = vmatprep.mubr.msk.f32.mxu0 %vm348_vm0, %v325_v23 }
  0x37   : > { %3394 = vmatmul.mubr.msk.f32.gmra.mrb[18].mxu0 %vm348_vm0, %v326_v24 }
  0x38   : > { %3396 = vmatprep.mubr.msk.f32.mxu0 %vm348_vm0, %v327_v25 }
  0x3b   : > { %3397 = vmatmul.mubr.msk.f32.gmra.mrb[20].mxu0 %vm348_vm0, %v328_v26 }
  0x3c   : > { %3399 = vmatprep.mubr.msk.f32.mxu0 %vm348_vm0, %v329_v27 }
  0x3f   : > { %3400 = vmatmul.mubr.msk.f32.gmra.mrb[22].mxu0 %vm348_vm0, %v330_v28 }
  0x40   : > { %3402 = vmatprep.mubr.msk.f32.mxu0 %vm348_vm0, %v331_v29 }
  0x43   : > { %3403 = vmatmul.mubr.msk.f32.gmra.mrb[24].mxu0 %vm348_vm0, %v332_v30 }
  0x44   : > { %3405 = vmatprep.mubr.msk.f32.mxu0 %vm348_vm0, %v333_v31 }
  0x47   : > { %3406 = vmatmul.mubr.msk.f32.gmra.mrb[26].mxu0 %vm348_vm0, %v334_v32 }
  0x48   : > { %3408 = vmatprep.mubr.msk.f32.mxu0 %vm348_vm0, %v335_v33 }
  0x4b   : > { %3409 = vmatmul.mubr.msk.f32.gmra.mrb[28].mxu0 %vm348_vm0, %v336_v34 }
  0x4c   : > { %3411 = vmatprep.mubr.msk.f32.mxu0 %vm348_vm0, %v337_v10 }
  0x4f   : > { %3412 = vmatmul.mubr.msk.f32.gmra.mrb[30].mxu0 %vm348_vm0, %v338_v12 }
  0xe6   : > { %v3368_v37 = vpop.f32.mrb[0].mxu0  ;;  %v3420_v38 = vpop.f32.mrb[0].mxu1 }
  0xe7   : > { %v517_v39 = vadd.f32 %v3368_v37, %v3999_v36  ;;  %v511_v40 = vpop.f32.mrb[1].mxu0  ;;  %v830_v41 = vadd.f32 %v3420_v38, %v3999_v36  ;;  %v824_v42 = vpop.f32.mrb[1].mxu1 }
  0xe8   : > { %v512_v43 = vadd.f32 %v3999_v36, %v511_v40  ;;  %v825_v44 = vadd.f32 %v3999_v36, %v824_v42 }
  0xe9   : > { %v671_v45 = vmax.f32 %v517_v39, 0.0  ;;  %v834_v46 = vmax.f32 %v830_v41, 0.0 }
  0xea   : > { %v670_v47 = vmax.f32 %v512_v43, 0.0  ;;  %v833_v48 = vmax.f32 %v825_v44, 0.0  ;;  %v3371_v49 = vpop.f32.mrb[2].mxu0  ;;  %v3427_v1 = vpop.f32.mrb[2].mxu1 }
  0xeb   : > { %705 = vst.msk [vmem:[#allocation2 + $0x21] sm:$0xff] %vm703_vm2, %v671_v45  ;;  %v840_v52 = vmul.f32 0.0, %v834_v46  ;;  %v527_v53 = vadd.f32 %v3371_v49, %v3999_v36  ;;  %v521_v54 = vpop.f32.mrb[3].mxu0  ;;  %v4034_v3 = vpop.f32.mrb[3].mxu1  ;;  %v937_v46 = vadd.f32 %v3427_v1, %v3999_v36 }
  0xec   : > { %704 = vst.msk [vmem:[#allocation2 + $0x19] sm:$0xff] %vm703_vm2, %v670_v47  ;;  %v839_v56 = vmul.f32 0.0, %v833_v48  ;;  %v522_v57 = vadd.f32 %v3999_v36, %v521_v54 }
  0xed   : > { %842 = vst.msk [vmem:[#allocation2 + $0x9] sm:$0xff] %vm703_vm2, %v840_v52  ;;  %v673_v58 = vmax.f32 %v527_v53, 0.0 }
  0xee   : > { %841 = vst.msk [vmem:[#allocation2 + $0x1] sm:$0xff] %vm703_vm2, %v839_v56  ;;  %v672_v60 = vmax.f32 %v522_v57, 0.0  ;;  %v3374_v61 = vpop.f32.mrb[4].mxu0 }
  0xef   : > { %707 = vst.msk [vmem:[#allocation2 + $0x39] sm:$0xff] %vm703_vm2, %v673_v58  ;;  %v537_v62 = vadd.f32 %v3374_v61, %v3999_v36  ;;  %v531_v63 = vpop.f32.mrb[5].mxu0  ;;  %v932_v61 = vadd.f32 %v3999_v36, %v4034_v3 }
  0xf0   : > { %706 = vst.msk [vmem:[#allocation2 + $0x31] sm:$0xff] %vm703_vm2, %v672_v60  ;;  %v532_v0 = vadd.f32 %v3999_v36, %v531_v63 }
  0xf1   : > { %v675_v2 = vmax.f32 %v537_v62, 0.0 }
  0xf2   : > { %v674_v4 = vmax.f32 %v532_v0, 0.0  ;;  %v3377_v5 = vpop.f32.mrb[6].mxu0  ;;  %v993_v6 = vld [vmem:[#allocation2 + $0x28] sm:$0x3] }
  0xf3   : > { %709 = vst.msk [vmem:[#allocation2 + $0x51] sm:$0xff] %vm703_vm2, %v675_v2  ;;  %v547_v7 = vadd.f32 %v3377_v5, %v3999_v36  ;;  %v541_v8 = vpop.f32.mrb[7].mxu0  ;;  %v4038_v9 = vld [vmem:[#allocation2 + $0x20] sm:$0xff]  ;;  %v1105_v10 = vrot.slane %v993_v6, 1  ;;  %v4040_v11 = vld [vmem:[#allocation2 + $0x18] sm:$0xff]  ;;  %v1304_v15 = vrot.slane %v993_v6, 2 }
  0xf4   : > { %708 = vst.msk [vmem:[#allocation2 + $0x49] sm:$0xff] %vm703_vm2, %v674_v4  ;;  %v542_v12 = vadd.f32 %v3999_v36, %v541_v8  ;;  %v1103_v13 = vrot.slane %v4038_v9, 1  ;;  %v1102_v14 = vrot.slane %v4040_v11, 1  ;;  %v1302_v17 = vrot.slane %v4038_v9, 2  ;;  %v990_v19 = vld [vmem:[#allocation2 + $0x10] sm:$0x3] }
  0xf5   : > { %v677_v16 = vmax.f32 %v547_v7, 0.0  ;;  %v4047_v18 = vld [vmem:[#allocation2 + $0x8] sm:$0xff]  ;;  %v4049_v20 = vld [vmem:[#allocation2] sm:$0xff]  ;;  %v1301_v25 = vrot.slane %v4040_v11, 2  ;;  %v1100_v30 = vrot.slane %v990_v19, 1  ;;  %v1299_v50 = vrot.slane %v990_v19, 2 }
  0xf6   : > { %v676_v21 = vmax.f32 %v542_v12, 0.0  ;;  %v1106_v22 = vsel %vm1096_vm6, %v1103_v13, %v1105_v10  ;;  %v1104_v23 = vsel %vm1096_vm6, %v1102_v14, %v1103_v13  ;;  %v3380_v24 = vpop.f32.mrb[8].mxu0  ;;  %v1098_v29 = vrot.slane %v4047_v18, 1  ;;  %v996_v45 = vld [vmem:[#allocation2 + $0x40] sm:$0x3] }
  0xf7   : > { %711 = vst.msk [vmem:[#allocation2 + $0x69] sm:$0xff] %vm703_vm2, %v677_v16  ;;  %1193 = vrot.lane.b32.xlu1 %v1106_v22, %s3816_s19  ;;  %1191 = vrot.lane.b32.xlu0 %v1104_v23, %s3816_s19  ;;  %v557_v26 = vadd.f32 %v3380_v24, %v3999_v36  ;;  %v551_v27 = vpop.f32.mrb[9].mxu0  ;;  %v1097_v31 = vrot.slane %v4049_v20, 1  ;;  %v1305_v34 = vsel %vm1295_vm7, %v1302_v17, %v1304_v15  ;;  %v4072_v44 = vld [vmem:[#allocation2 + $0x38] sm:$0xff]  ;;  %v1297_v49 = vrot.slane %v4047_v18, 2  ;;  %v4077_v52 = vld [vmem:[#allocation2 + $0x30] sm:$0xff] }
  0xf8   : > { %710 = vst.msk [vmem:[#allocation2 + $0x61] sm:$0xff] %vm703_vm2, %v676_v21  ;;  %v552_v28 = vadd.f32 %v3999_v36, %v551_v27  ;;  %v1303_v35 = vsel %vm1295_vm7, %v1301_v25, %v1302_v17  ;;  %v1101_v41 = vsel %vm1096_vm6, %v1098_v29, %v1100_v30  ;;  %v1296_v51 = vrot.slane %v4049_v20, 2 }
  0xf9   : > { %v679_v32 = vmax.f32 %v557_v26, 0.0  ;;  %v1099_v42 = vsel %vm1096_vm6, %v1097_v31, %v1098_v29  ;;  %v1108_v56 = vrot.slane %v4072_v44, 1  ;;  %v1110_v57 = vrot.slane %v996_v45, 1 }
  0xfa   : > { %v678_v33 = vmax.f32 %v552_v28, 0.0  ;;  %v3383_v37 = vpop.f32.mrb[10].mxu0  ;;  %v1107_v60 = vrot.slane %v4077_v52, 1  ;;  %v1300_v63 = vsel %vm1295_vm7, %v1297_v49, %v1299_v50  ;;  %v1298_v0 = vsel %vm1295_vm7, %v1296_v51, %v1297_v49  ;;  %v999_v13 = vld [vmem:[#allocation2 + $0x58] sm:$0x3] }
  0xfb   : > { %713 = vst.msk [vmem:[#allocation2 + $0x81] sm:$0xff] %vm703_vm2, %v679_v32  ;;  %1392 = vrot.lane.b32.xlu1 %v1305_v34, %s3817_s20  ;;  %1390 = vrot.lane.b32.xlu0 %v1303_v35, %s3817_s20  ;;  %v567_v38 = vadd.f32 %v3383_v37, %v3999_v36  ;;  %v561_v39 = vpop.f32.mrb[11].mxu0  ;;  %v941_v2 = vmax.f32 %v937_v46, 0.0  ;;  %v1111_v6 = vsel %vm1096_vm6, %v1108_v56, %v1110_v57  ;;  %v1307_v10 = vrot.slane %v4072_v44, 2  ;;  %v4101_v17 = vld [vmem:[#allocation2 + $0x50] sm:$0xff]  ;;  %v4107_v24 = vld [vmem:[#allocation2 + $0x48] sm:$0xff] }
  0xfc   : > { %712 = vst.msk [vmem:[#allocation2 + $0x79] sm:$0xff] %vm703_vm2, %v678_v33  ;;  %v562_v40 = vadd.f32 %v3999_v36, %v561_v39  ;;  %v1109_v8 = vsel %vm1096_vm6, %v1107_v60, %v1108_v56  ;;  %v1309_v12 = vrot.slane %v996_v45, 2  ;;  %v1306_v16 = vrot.slane %v4077_v52, 2 }
  0xfd   : > { %v681_v43 = vmax.f32 %v567_v38, 0.0  ;;  %v947_v19 = vmul.f32 0.0, %v941_v2  ;;  %v940_v21 = vmax.f32 %v932_v61, 0.0  ;;  %v1113_v28 = vrot.slane %v4101_v17, 1 }
  0xfe   : > { %v680_v47 = vmax.f32 %v562_v40, 0.0  ;;  %v3386_v48 = vpop.f32.mrb[12].mxu0  ;;  %v1310_v27 = vsel %vm1295_vm7, %v1307_v10, %v1309_v12  ;;  %v1115_v29 = vrot.slane %v999_v13, 1  ;;  %v1308_v31 = vsel %vm1295_vm7, %v1306_v16, %v1307_v10  ;;  %v1002_v49 = vld [vmem:[#allocation2 + $0x70] sm:$0x3] }
  0xff   : > { %715 = vst.msk [vmem:[#allocation2 + $0x99] sm:$0xff] %vm703_vm2, %v681_v43  ;;  %1189 = vrot.lane.b32.xlu1 %v1101_v41, %s3816_s19  ;;  %1187 = vrot.lane.b32.xlu0 %v1099_v42, %s3816_s19  ;;  %v577_v53 = vadd.f32 %v3386_v48, %v3999_v36  ;;  %v571_v54 = vpop.f32.mrb[13].mxu0  ;;  %950 = vst.msk [vmem:[#allocation2 + $0x1a1] sm:$0xff] %vm703_vm2, %v947_v19  ;;  %v1112_v33 = vrot.slane %v4107_v24, 1  ;;  %v946_v34 = vmul.f32 0.0, %v940_v21  ;;  %v1312_v40 = vrot.slane %v4101_v17, 2 }
 0x100   : > { %714 = vst.msk [vmem:[#allocation2 + $0x91] sm:$0xff] %vm703_vm2, %v680_v47  ;;  %v572_v55 = vadd.f32 %v3999_v36, %v571_v54  ;;  %v1314_v41 = vrot.slane %v999_v13, 2  ;;  %v1116_v43 = vsel %vm1096_vm6, %v1113_v28, %v1115_v29  ;;  %v1311_v46 = vrot.slane %v4107_v24, 2  ;;  %v4127_v48 = vld [vmem:[#allocation2 + $0x68] sm:$0xff] }
 0x101   : > { %v683_v58 = vmax.f32 %v577_v53, 0.0  ;;  %949 = vst.msk [vmem:[#allocation2 + $0x199] sm:$0xff] %vm703_vm2, %v946_v34  ;;  %v1114_v45 = vsel %vm1096_vm6, %v1112_v33, %v1113_v28  ;;  %v4133_v53 = vld [vmem:[#allocation2 + $0x60] sm:$0xff]  ;;  %v1118_v56 = vrot.slane %v4127_v48, 1  ;;  %v1120_v57 = vrot.slane %v1002_v49, 1 }
 0x102   : > { %v682_v62 = vmax.f32 %v572_v55, 0.0  ;;  %v3389_v1 = vpop.f32.mrb[14].mxu0  ;;  %v1313_v60 = vsel %vm1295_vm7, %v1311_v46, %v1312_v40 }
 0x103   : > { %717 = vst.msk [vmem:[#allocation2 + $0xb1] sm:$0xff] %vm703_vm2, %v683_v58  ;;  %1388 = vrot.lane.b32.xlu1 %v1300_v63, %s3817_s20  ;;  %1386 = vrot.lane.b32.xlu0 %v1298_v0, %s3817_s20  ;;  %v587_v4 = vadd.f32 %v3389_v1, %v3999_v36  ;;  %v581_v5 = vpop.f32.mrb[15].mxu0  ;;  %v1315_v58 = vsel %vm1295_vm7, %v1312_v40, %v1314_v41 }
 0x104   : > { %716 = vst.msk [vmem:[#allocation2 + $0xa9] sm:$0xff] %vm703_vm2, %v682_v62  ;;  %v582_v3 = vadd.f32 %v3999_v36, %v581_v5  ;;  %v1117_v62 = vrot.slane %v4133_v53, 1  ;;  %v1317_v5 = vrot.slane %v4127_v48, 2 }
 0x105   : > { %v685_v7 = vmax.f32 %v587_v4, 0.0  ;;  %v1121_v4 = vsel %vm1096_vm6, %v1118_v56, %v1120_v57 }
 0x106   : > { %v684_v14 = vmax.f32 %v582_v3, 0.0  ;;  %v3392_v15 = vpop.f32.mrb[16].mxu0 }
 0x107   : > { %719 = vst.msk [vmem:[#allocation2 + $0xc9] sm:$0xff] %vm703_vm2, %v685_v7  ;;  %1197 = vrot.lane.b32.xlu1 %v1111_v6, %s3816_s19  ;;  %1195 = vrot.lane.b32.xlu0 %v1109_v8, %s3816_s19  ;;  %v597_v22 = vadd.f32 %v3392_v15, %v3999_v36  ;;  %v591_v23 = vpop.f32.mrb[17].mxu0  ;;  %v1119_v6 = vsel %vm1096_vm6, %v1117_v62, %v1118_v56  ;;  %v1319_v7 = vrot.slane %v1002_v49, 2  ;;  %v1316_v8 = vrot.slane %v4133_v53, 2 }
 0x108   : > { %718 = vst.msk [vmem:[#allocation2 + $0xc1] sm:$0xff] %vm703_vm2, %v684_v14  ;;  %v592_v25 = vadd.f32 %v3999_v36, %v591_v23 }
 0x109   : > { %v687_v26 = vmax.f32 %v597_v22, 0.0  ;;  %v1318_v28 = vsel %vm1295_vm7, %v1316_v8, %v1317_v5 }
 0x10a   : > { %v686_v30 = vmax.f32 %v592_v25, 0.0  ;;  %v3395_v32 = vpop.f32.mrb[18].mxu0 }
 0x10b   : > { %721 = vst.msk [vmem:[#allocation2 + $0xe1] sm:$0xff] %vm703_vm2, %v687_v26  ;;  %1396 = vrot.lane.b32.xlu1 %v1310_v27, %s3817_s20  ;;  %1394 = vrot.lane.b32.xlu0 %v1308_v31, %s3817_s20  ;;  %v607_v35 = vadd.f32 %v3395_v32, %v3999_v36  ;;  %v601_v37 = vpop.f32.mrb[19].mxu0  ;;  %v1320_v27 = vsel %vm1295_vm7, %v1317_v5, %v1319_v7 }
 0x10c   : > { %720 = vst.msk [vmem:[#allocation2 + $0xd9] sm:$0xff] %vm703_vm2, %v686_v30  ;;  %v602_v38 = vadd.f32 %v3999_v36, %v601_v37 }
 0x10d   : > { %v689_v39 = vmax.f32 %v607_v35, 0.0 }
 0x10e   : > { %v688_v42 = vmax.f32 %v602_v38, 0.0  ;;  %v3398_v47 = vpop.f32.mrb[20].mxu0 }
 0x10f   : > { %723 = vst.msk [vmem:[#allocation2 + $0xf9] sm:$0xff] %vm703_vm2, %v689_v39  ;;  %1201 = vrot.lane.b32.xlu1 %v1116_v43, %s3816_s19  ;;  %1199 = vrot.lane.b32.xlu0 %v1114_v45, %s3816_s19  ;;  %v617_v50 = vadd.f32 %v3398_v47, %v3999_v36  ;;  %v611_v51 = vpop.f32.mrb[21].mxu0 }
 0x110   : > { %722 = vst.msk [vmem:[#allocation2 + $0xf1] sm:$0xff] %vm703_vm2, %v688_v42  ;;  %v612_v54 = vadd.f32 %v3999_v36, %v611_v51 }
 0x111   : > { %v691_v55 = vmax.f32 %v617_v50, 0.0 }
 0x112   : > { %v690_v61 = vmax.f32 %v612_v54, 0.0  ;;  %v3401_v63 = vpop.f32.mrb[22].mxu0 }
 0x113   : > { %1400 = vrot.lane.b32.xlu1 %v1315_v58, %s3817_s20  ;;  %1398 = vrot.lane.b32.xlu0 %v1313_v60, %s3817_s20  ;;  %725 = vst.msk [vmem:[#allocation2 + $0x111] sm:$0xff] %vm703_vm2, %v691_v55  ;;  %v627_v0 = vadd.f32 %v3401_v63, %v3999_v36  ;;  %v621_v1 = vpop.f32.mrb[23].mxu0 }
 0x114   : > { %724 = vst.msk [vmem:[#allocation2 + $0x109] sm:$0xff] %vm703_vm2, %v690_v61  ;;  %v622_v2 = vadd.f32 %v3999_v36, %v621_v1 }
 0x115   : > { %v693_v3 = vmax.f32 %v627_v0, 0.0 }
 0x116   : > { %v692_v10 = vmax.f32 %v622_v2, 0.0  ;;  %v3404_v12 = vpop.f32.mrb[24].mxu0  ;;  %v1020_v30 = vld [vmem:[#allocation2 + $0x100] sm:$0x3] }
 0x117   : > { %1205 = vrot.lane.b32.xlu1 %v1121_v4, %s3816_s19  ;;  %1203 = vrot.lane.b32.xlu0 %v1119_v6, %s3816_s19  ;;  %727 = vst.msk [vmem:[#allocation2 + $0x129] sm:$0xff] %vm703_vm2, %v693_v3  ;;  %v4154_v13 = vld [vmem:[#allocation2 + $0xf0] sm:$0xff]  ;;  %v4156_v14 = vld [vmem:[#allocation2 + $0xf8] sm:$0xff]  ;;  %v637_v15 = vadd.f32 %v3404_v12, %v3999_v36  ;;  %v631_v16 = vpop.f32.mrb[25].mxu0  ;;  %v1349_v42 = vrot.slane %v1020_v30, 2  ;;  %v1150_v43 = vrot.slane %v1020_v30, 1 }
 0x118   : > { %726 = vst.msk [vmem:[#allocation2 + $0x121] sm:$0xff] %vm703_vm2, %v692_v10  ;;  %v1346_v19 = vrot.slane %v4154_v13, 2  ;;  %v1347_v21 = vrot.slane %v4156_v14, 2  ;;  %v1147_v22 = vrot.slane %v4154_v13, 1  ;;  %v1148_v23 = vrot.slane %v4156_v14, 1 }
 0x119   : > { %v695_v25 = vmax.f32 %v637_v15, 0.0  ;;  %v632_v26 = vadd.f32 %v3999_v36, %v631_v16 }
 0x11a   : > { %v3407_v29 = vpop.f32.mrb[26].mxu0  ;;  %v1348_v34 = vsel %vm1295_vm7, %v1346_v19, %v1347_v21  ;;  %v1149_v35 = vsel %vm1096_vm6, %v1147_v22, %v1148_v23  ;;  %v1023_v38 = vld [vmem:[#allocation2 + $0x118] sm:$0x3]  ;;  %v1350_v57 = vsel %vm1295_vm7, %v1347_v21, %v1349_v42  ;;  %v1151_v58 = vsel %vm1096_vm6, %v1148_v23, %v1150_v43 }
 0x11b   : > { %1404 = vrot.lane.b32.xlu1 %v1320_v27, %s3817_s20  ;;  %1402 = vrot.lane.b32.xlu0 %v1318_v28, %s3817_s20  ;;  %729 = vst.msk [vmem:[#allocation2 + $0x141] sm:$0xff] %vm703_vm2, %v695_v25  ;;  %v694_v31 = vmax.f32 %v632_v26, 0.0  ;;  %v647_v32 = vadd.f32 %v3407_v29, %v3999_v36  ;;  %v641_v33 = vpop.f32.mrb[27].mxu0  ;;  %v4174_v37 = vld [vmem:[#allocation2 + $0x110] sm:$0xff]  ;;  %v4176_v39 = vld [vmem:[#allocation2 + $0x108] sm:$0xff]  ;;  %v1155_v51 = vrot.slane %v1023_v38, 1 }
 0x11c   : > { %v642_v41 = vadd.f32 %v3999_v36, %v641_v33  ;;  %v1153_v50 = vrot.slane %v4174_v37, 1  ;;  %v1152_v54 = vrot.slane %v4176_v39, 1  ;;  %v1354_v4 = vrot.slane %v1023_v38, 2 }
 0x11d   : > { %728 = vst.msk [vmem:[#allocation2 + $0x139] sm:$0xff] %vm703_vm2, %v694_v31  ;;  %v697_v40 = vmax.f32 %v647_v32, 0.0  ;;  %v1352_v7 = vrot.slane %v4174_v37, 2  ;;  %v1351_v8 = vrot.slane %v4176_v39, 2 }
 0x11e   : > { %v3410_v45 = vpop.f32.mrb[28].mxu0  ;;  %v696_v46 = vmax.f32 %v642_v41, 0.0  ;;  %v1156_v0 = vsel %vm1096_vm6, %v1153_v50, %v1155_v51  ;;  %v1154_v1 = vsel %vm1096_vm6, %v1152_v54, %v1153_v50  ;;  %v1026_v3 = vld [vmem:[#allocation2 + $0x130] sm:$0x3] }
 0x11f   : > { %1426 = vrot.lane.b32.xlu1 %v1348_v34, %s3817_s20  ;;  %1227 = vrot.lane.b32.xlu0 %v1149_v35, %s3816_s19  ;;  %731 = vst.msk [vmem:[#allocation2 + $0x159] sm:$0xff] %vm703_vm2, %v697_v40  ;;  %v657_v47 = vadd.f32 %v3410_v45, %v3999_v36  ;;  %v651_v49 = vpop.f32.mrb[29].mxu0  ;;  %v4196_v5 = vld [vmem:[#allocation2 + $0x128] sm:$0xff]  ;;  %v4198_v6 = vld [vmem:[#allocation2 + $0x120] sm:$0xff]  ;;  %v1160_v15 = vrot.slane %v1026_v3, 1  ;;  %v1355_v19 = vsel %vm1295_vm7, %v1352_v7, %v1354_v4  ;;  %v1359_v29 = vrot.slane %v1026_v3, 2 }
 0x120   : > { %730 = vst.msk [vmem:[#allocation2 + $0x151] sm:$0xff] %vm703_vm2, %v696_v46  ;;  %v652_v56 = vadd.f32 %v3999_v36, %v651_v49  ;;  %v1157_v16 = vrot.slane %v4198_v6, 1  ;;  %v1353_v21 = vsel %vm1295_vm7, %v1351_v8, %v1352_v7  ;;  %v1357_v28 = vrot.slane %v4196_v5, 2  ;;  %v1567_v34 = vld [vmem:[%s4991_s3] sm:$0xff]  ;;  %v1568_v35 = vld [vmem:[%s4991_s3 + $0x8] sm:$0xf] }
 0x121   : > { %v699_v55 = vmax.f32 %v657_v47, 0.0  ;;  %v1356_v30 = vrot.slane %v4198_v6, 2  ;;  %v4231_v38 = vpack.c.bf16 %v1568_v35, %v1567_v34 }
 0x122   : > { %v3413_v60 = vpop.f32.mrb[30].mxu0  ;;  %v698_v61 = vmax.f32 %v652_v56, 0.0  ;;  %v1029_v26 = vld [vmem:[#allocation2 + $0x148] sm:$0x3]  ;;  %v1360_v40 = vsel %vm1295_vm7, %v1357_v28, %v1359_v29 }
 0x123   : > { %1428 = vrot.lane.b32.xlu1 %v1350_v57, %s3817_s20  ;;  %1229 = vrot.lane.b32.xlu0 %v1151_v58, %s3816_s19  ;;  %733 = vst.msk [vmem:[#allocation2 + $0x171] sm:$0xff] %vm703_vm2, %v699_v55  ;;  %v667_v62 = vadd.f32 %v3413_v60, %v3999_v36  ;;  %v661_v63 = vpop.f32.mrb[31].mxu0  ;;  %v1165_v32 = vrot.slane %v1029_v26, 1  ;;  %v1358_v41 = vsel %vm1295_vm7, %v1356_v30, %v1357_v28  ;;  %v1364_v50 = vrot.slane %v1029_v26, 2 }
 0x124   : > { %v662_v2 = vadd.f32 %v3999_v36, %v661_v63  ;;  %732 = vst.msk [vmem:[#allocation2 + $0x169] sm:$0xff] %vm703_vm2, %v698_v61  ;;  %v1158_v36 = vrot.slane %v4196_v5, 1  ;;  %v4215_v25 = vld [vmem:[#allocation2 + $0x140] sm:$0xff]  ;;  %v4217_v27 = vld [vmem:[#allocation2 + $0x138] sm:$0xff]  ;;  %3654 = vmatprep.subr.msk.bf16.mxu1 %vm4017_vm5, %v4231_v38 }
 0x125   : > { %v701_v10 = vmax.f32 %v667_v62, 0.0  ;;  %v1163_v31 = vrot.slane %v4215_v25, 1  ;;  %v1162_v33 = vrot.slane %v4217_v27, 1  ;;  %v1362_v49 = vrot.slane %v4215_v25, 2 }
 0x126   : > { %v700_v12 = vmax.f32 %v662_v2, 0.0  ;;  %v1161_v22 = vsel %vm1096_vm6, %v1158_v36, %v1160_v15  ;;  %v1159_v23 = vsel %vm1096_vm6, %v1157_v16, %v1158_v36  ;;  %v1032_v46 = vld [vmem:[#allocation2 + $0x160] sm:$0x3]  ;;  %v1361_v51 = vrot.slane %v4217_v27, 2 }
 0x127   : > { %1233 = vrot.lane.b32.xlu1 %v1156_v0, %s3816_s19  ;;  %1231 = vrot.lane.b32.xlu0 %v1154_v1, %s3816_s19  ;;  %735 = vst.msk [vmem:[#allocation2 + $0x189] sm:$0xff] %vm703_vm2, %v701_v10  ;;  %v1166_v42 = vsel %vm1096_vm6, %v1163_v31, %v1165_v32  ;;  %v1164_v43 = vsel %vm1096_vm6, %v1162_v33, %v1163_v31  ;;  %v4242_v45 = vld [vmem:[#allocation2 + $0x158] sm:$0xff]  ;;  %v4244_v47 = vld [vmem:[#allocation2 + $0x150] sm:$0xff]  ;;  %v1170_v55 = vrot.slane %v1032_v46, 1  ;;  %v1369_v2 = vrot.slane %v1032_v46, 2 }
 0x128   : > { %734 = vst.msk [vmem:[#allocation2 + $0x181] sm:$0xff] %vm703_vm2, %v700_v12  ;;  %v1168_v54 = vrot.slane %v4242_v45, 1  ;;  %v1167_v56 = vrot.slane %v4244_v47, 1  ;;  %v1365_v57 = vsel %vm1295_vm7, %v1362_v49, %v1364_v50  ;;  %v1363_v58 = vsel %vm1295_vm7, %v1361_v51, %v1362_v49  ;;  %v4296_v46 = vld [vmem:[#allocation2 + $0x78] sm:$0xff] }
 0x129   : > { %v1367_v1 = vrot.slane %v4242_v45, 2  ;;  %v1366_v4 = vrot.slane %v4244_v47, 2 }
 0x12a   : > { %v1171_v60 = vsel %vm1096_vm6, %v1168_v54, %v1170_v55  ;;  %v1169_v61 = vsel %vm1096_vm6, %v1167_v56, %v1168_v54  ;;  %v1035_v63 = vld [vmem:[#allocation2 + $0x178] sm:$0x3]  ;;  %v1122_v55 = vrot.slane %v4296_v46, 1 }
 0x12b   : > { %1432 = vrot.lane.b32.xlu1 %v1355_v19, %s3817_s20  ;;  %1430 = vrot.lane.b32.xlu0 %v1353_v21, %s3817_s20  ;;  %v4258_v62 = vld [vmem:[#allocation2 + $0x170] sm:$0xff]  ;;  %v4260_v0 = vld [vmem:[#allocation2 + $0x168] sm:$0xff]  ;;  %v1175_v7 = vrot.slane %v1035_v63, 1  ;;  %v1370_v10 = vsel %vm1295_vm7, %v1367_v1, %v1369_v2  ;;  %v1368_v12 = vsel %vm1295_vm7, %v1366_v4, %v1367_v1  ;;  %v1008_v1 = vld [vmem:[#allocation2 + $0xa0] sm:$0x3] }
 0x12c   : > { %v1173_v3 = vrot.slane %v4258_v62, 1  ;;  %v1172_v8 = vrot.slane %v4260_v0, 1  ;;  %v1371_v26 = vrot.slane %v4260_v0, 2  ;;  %v4312_v2 = vld [vmem:[#allocation2 + $0x90] sm:$0xff] }
 0x12e   : > { %v1176_v36 = vsel %vm1096_vm6, %v1173_v3, %v1175_v7  ;;  %v1174_v15 = vsel %vm1096_vm6, %v1172_v8, %v1173_v3  ;;  %v1038_v19 = vld [vmem:[#allocation2 + $0x190] sm:$0x3]  ;;  %v1130_v8 = vrot.slane %v1008_v1, 1 }
 0x12f   : > { %1237 = vrot.lane.b32.xlu1 %v1161_v22, %s3816_s19  ;;  %1235 = vrot.lane.b32.xlu0 %v1159_v23, %s3816_s19  ;;  %v4274_v16 = vld [vmem:[#allocation2 + $0x188] sm:$0xff]  ;;  %v4276_v21 = vld [vmem:[#allocation2 + $0x180] sm:$0xff]  ;;  %v1372_v22 = vrot.slane %v4258_v62, 2  ;;  %v1374_v23 = vrot.slane %v1035_v63, 2  ;;  %v1180_v29 = vrot.slane %v1038_v19, 1  ;;  %v4310_v63 = vld [vmem:[#allocation2 + $0x98] sm:$0xff] }
 0x130   : > { %v1178_v28 = vrot.slane %v4274_v16, 1  ;;  %v1177_v30 = vrot.slane %v4276_v21, 1  ;;  %v1377_v35 = vrot.slane %v4274_v16, 2  ;;  %v1128_v7 = vrot.slane %v4310_v63, 1 }
 0x131   : > { %v1375_v31 = vsel %vm1295_vm7, %v1372_v22, %v1374_v23  ;;  %v1373_v32 = vsel %vm1295_vm7, %v1371_v26, %v1372_v22  ;;  %v1326_v22 = vrot.slane %v4312_v2, 2  ;;  %v4326_v23 = vld [vmem:[#allocation2 + $0xb0] sm:$0xff]  ;;  %v1011_v26 = vld [vmem:[#allocation2 + $0xb8] sm:$0x3] }
 0x132   : > { %v1181_v33 = vsel %vm1096_vm6, %v1178_v28, %v1180_v29  ;;  %v1179_v34 = vsel %vm1096_vm6, %v1177_v30, %v1178_v28  ;;  %v4328_v28 = vld [vmem:[#allocation2 + $0xa8] sm:$0xff] }
 0x133   : > { %1436 = vrot.lane.b32.xlu1 %v1360_v40, %s3817_s20  ;;  %1434 = vrot.lane.b32.xlu0 %v1358_v41, %s3817_s20  ;;  %v1379_v40 = vrot.slane %v1038_v19, 2  ;;  %v1376_v41 = vrot.slane %v4276_v21, 2 }
 0x135   : > { %v1380_v50 = vsel %vm1295_vm7, %v1377_v35, %v1379_v40  ;;  %v1378_v51 = vsel %vm1295_vm7, %v1376_v41, %v1377_v35  ;;  %v1334_v35 = vrot.slane %v1011_v26, 2 }
 0x137   : > { %1241 = vrot.lane.b32.xlu1 %v1166_v42, %s3816_s19  ;;  %1239 = vrot.lane.b32.xlu0 %v1164_v43, %s3816_s19  ;;  %v1005_v42 = vld [vmem:[#allocation2 + $0x88] sm:$0x3]  ;;  %v4294_v43 = vld [vmem:[#allocation2 + $0x80] sm:$0xff] }
 0x138   : > { %v1125_v49 = vrot.slane %v1005_v42, 1  ;;  %v1123_v54 = vrot.slane %v4294_v43, 1  ;;  %v1322_v56 = vrot.slane %v4294_v43, 2 }
 0x13b   : > { %1440 = vrot.lane.b32.xlu1 %v1365_v57, %s3817_s20  ;;  %1438 = vrot.lane.b32.xlu0 %v1363_v58, %s3817_s20  ;;  %v1324_v57 = vrot.slane %v1005_v42, 2  ;;  %v1126_v58 = vsel %vm1096_vm6, %v1123_v54, %v1125_v49  ;;  %v1331_v42 = vrot.slane %v4328_v28, 2  ;;  %v4342_v49 = vld [vmem:[#allocation2 + $0xc8] sm:$0xff] }
 0x13d   : > { %v1325_v4 = vsel %vm1295_vm7, %v1322_v56, %v1324_v57 }
 0x13f   : > { %1245 = vrot.lane.b32.xlu1 %v1171_v60, %s3816_s19  ;;  %1243 = vrot.lane.b32.xlu0 %v1169_v61, %s3816_s19  ;;  %v1124_v60 = vsel %vm1096_vm6, %v1122_v55, %v1123_v54  ;;  %v1321_v61 = vrot.slane %v4296_v46, 2 }
 0x141   : > { %v1323_v3 = vsel %vm1295_vm7, %v1321_v61, %v1322_v56 }
 0x143   : > { %1444 = vrot.lane.b32.xlu1 %v1370_v10, %s3817_s20  ;;  %1442 = vrot.lane.b32.xlu0 %v1368_v12, %s3817_s20  ;;  %v1127_v10 = vrot.slane %v4312_v2, 1  ;;  %v1327_v12 = vrot.slane %v4310_v63, 2 }
 0x145   : > { %v1129_v19 = vsel %vm1096_vm6, %v1127_v10, %v1128_v7  ;;  %v1328_v30 = vsel %vm1295_vm7, %v1326_v22, %v1327_v12 }
 0x147   : > { %1249 = vrot.lane.b32.xlu1 %v1176_v36, %s3816_s19  ;;  %1247 = vrot.lane.b32.xlu0 %v1174_v15, %s3816_s19  ;;  %v1329_v36 = vrot.slane %v1008_v1, 2  ;;  %v1131_v15 = vsel %vm1096_vm6, %v1128_v7, %v1130_v8  ;;  %v1337_v1 = vrot.slane %v4342_v49, 2 }
 0x149   : > { %v1330_v29 = vsel %vm1295_vm7, %v1327_v12, %v1329_v36 }
 0x14b   : > { %1448 = vrot.lane.b32.xlu1 %v1375_v31, %s3817_s20  ;;  %1446 = vrot.lane.b32.xlu0 %v1373_v32, %s3817_s20  ;;  %v1133_v31 = vrot.slane %v4326_v23, 1  ;;  %v1135_v32 = vrot.slane %v1011_v26, 1  ;;  %v4370_v26 = vld [vmem:[#allocation2 + $0xd8] sm:$0xff] }
 0x14d   : > { %v1136_v40 = vsel %vm1096_vm6, %v1133_v31, %v1135_v32 }
 0x14f   : > { %1253 = vrot.lane.b32.xlu1 %v1181_v33, %s3816_s19  ;;  %1251 = vrot.lane.b32.xlu0 %v1179_v34, %s3816_s19  ;;  %v1132_v33 = vrot.slane %v4328_v28, 1  ;;  %v1332_v34 = vrot.slane %v4326_v23, 2 }
 0x151   : > { %v1134_v41 = vsel %vm1096_vm6, %v1132_v33, %v1133_v31  ;;  %v1335_v56 = vsel %vm1295_vm7, %v1332_v34, %v1334_v35  ;;  %v1333_v57 = vsel %vm1295_vm7, %v1331_v42, %v1332_v34  ;;  %v1142_v35 = vrot.slane %v4370_v26, 1 }
 0x153   : > { %1452 = vrot.lane.b32.xlu1 %v1380_v50, %s3817_s20  ;;  %1450 = vrot.lane.b32.xlu0 %v1378_v51, %s3817_s20  ;;  %v1014_v50 = vld [vmem:[#allocation2 + $0xd0] sm:$0x3]  ;;  %v4344_v51 = vld [vmem:[#allocation2 + $0xc0] sm:$0xff] }
 0x154   : > { %v1137_v61 = vrot.slane %v4344_v51, 1  ;;  %v1339_v10 = vrot.slane %v1014_v50, 2  ;;  %v1336_v12 = vrot.slane %v4344_v51, 2 }
 0x156   : > { %v1340_v31 = vsel %vm1295_vm7, %v1337_v1, %v1339_v10  ;;  %v1338_v32 = vsel %vm1295_vm7, %v1336_v12, %v1337_v1 }
 0x157   : > { %1209 = vrot.lane.b32.xlu1 %v1126_v58, %s3816_s19  ;;  %1207 = vrot.lane.b32.xlu0 %v1124_v60, %s3816_s19  ;;  %v1138_v58 = vrot.slane %v4342_v49, 1  ;;  %v1140_v60 = vrot.slane %v1014_v50, 1 }
 0x159   : > { %v1139_v22 = vsel %vm1096_vm6, %v1137_v61, %v1138_v58 }
 0x15b   : > { %1408 = vrot.lane.b32.xlu1 %v1325_v4, %s3817_s20  ;;  %1406 = vrot.lane.b32.xlu0 %v1323_v3, %s3817_s20 }
 0x15f   : > { %1213 = vrot.lane.b32.xlu1 %v1131_v15, %s3816_s19  ;;  %1211 = vrot.lane.b32.xlu0 %v1129_v19, %s3816_s19  ;;  %v1141_v19 = vsel %vm1096_vm6, %v1138_v58, %v1140_v60  ;;  %v1041_v58 = vld [vmem:[#allocation2 + $0x1a8] sm:$0x3]  ;;  %v4390_v60 = vld [vmem:[#allocation2 + $0x198] sm:$0xff] }
 0x163   : > { %1412 = vrot.lane.b32.xlu1 %v1330_v29, %s3817_s20  ;;  %1410 = vrot.lane.b32.xlu0 %v1328_v30, %s3817_s20 }
 0x167   : > { %1217 = vrot.lane.b32.xlu1 %v1136_v40, %s3816_s19  ;;  %1215 = vrot.lane.b32.xlu0 %v1134_v41, %s3816_s19 }
 0x169   : > { %v1194_v54 = vpop.permute.xlu1 %1193  ;;  %v1192_v55 = vpop.permute.xlu0 %1191 }
 0x16a   : > { %v1497_v4 = vsel %vm703_vm2, %v4038_v9, %v1194_v54  ;;  %v1496_v3 = vsel %vm703_vm2, %v4040_v11, %v1192_v55  ;;  %v4368_v9 = vld [vmem:[#allocation2 + $0xe0] sm:$0xff]  ;;  %v1017_v11 = vld [vmem:[#allocation2 + $0xe8] sm:$0x3] }
 0x16b   : > { %1416 = vrot.lane.b32.xlu1 %v1335_v56, %s3817_s20  ;;  %1414 = vrot.lane.b32.xlu0 %v1333_v57, %s3817_s20  ;;  %v1143_v33 = vrot.slane %v4368_v9, 1  ;;  %v1145_v34 = vrot.slane %v1017_v11, 1  ;;  %v1342_v40 = vrot.slane %v4368_v9, 2  ;;  %v1344_v55 = vrot.slane %v1017_v11, 2  ;;  %v4388_v57 = vld [vmem:[#allocation2 + $0x1a0] sm:$0xff] }
 0x16c   : > { %v1341_v56 = vrot.slane %v4370_v26, 2 }
 0x16d   : > { %v1393_v7 = vpop.permute.xlu1 %1392  ;;  %v1391_v8 = vpop.permute.xlu0 %1390  ;;  %v1345_v12 = vsel %vm1295_vm7, %v1342_v40, %v1344_v55 }
 0x16e   : > { %v4359_v36 = vsel %vm1530_vm8, %v1497_v4, %v1393_v7  ;;  %v4362_v15 = vsel %vm1530_vm8, %v1496_v3, %v1391_v8  ;;  %v1183_v4 = vrot.slane %v4388_v57, 1  ;;  %v1185_v3 = vrot.slane %v1041_v58, 1 }
 0x16f   : > { %1221 = vrot.lane.b32.xlu1 %v1141_v19, %s3816_s19  ;;  %1219 = vrot.lane.b32.xlu0 %v1139_v22, %s3816_s19  ;;  %v1182_v7 = vrot.slane %v4390_v60, 1  ;;  %v1343_v19 = vsel %vm1295_vm7, %v1341_v56, %v1342_v40  ;;  %v1384_v22 = vrot.slane %v1041_v58, 2 }
 0x170   : > { %3432 = vmatprep.mubr.msk.f32.mxu0 %vm1572_vm9, %v4362_v15  ;;  %v1186_v11 = vsel %vm1096_vm6, %v1183_v4, %v1185_v3 }
 0x171   : > { %3433 = vmatmul.mubr.msk.f32.vlgmr.msra.gmra.mrb[32].mxu0 %vm1572_vm9, %v4359_v36  ;;  %v1190_v29 = vpop.permute.xlu1 %1189  ;;  %v1188_v30 = vpop.permute.xlu0 %1187 }
 0x172   : > { %v1495_v41 = vsel %vm703_vm2, %v4047_v18, %v1190_v29  ;;  %v1494_v42 = vsel %vm703_vm2, %v4049_v20, %v1188_v30  ;;  %v1146_v18 = vsel %vm1096_vm6, %v1143_v33, %v1145_v34  ;;  %v1144_v20 = vsel %vm1096_vm6, %v1142_v35, %v1143_v33 }
 0x173   : > { %1420 = vrot.lane.b32.xlu1 %v1340_v31, %s3817_s20  ;;  %1418 = vrot.lane.b32.xlu0 %v1338_v32, %s3817_s20  ;;  %v1184_v29 = vsel %vm1096_vm6, %v1182_v7, %v1183_v4  ;;  %v1382_v30 = vrot.slane %v4388_v57, 2  ;;  %v1381_v31 = vrot.slane %v4390_v60, 2 }
 0x175   : > { %v1389_v50 = vpop.permute.xlu1 %1388  ;;  %v1387_v54 = vpop.permute.xlu0 %1386 }
 0x176   : > { %v4393_v61 = vsel %vm1530_vm8, %v1495_v41, %v1389_v50  ;;  %v4396_v1 = vsel %vm1530_vm8, %v1494_v42, %v1387_v54  ;;  %v1383_v42 = vsel %vm1295_vm7, %v1381_v31, %v1382_v30 }
 0x177   : > { %1225 = vrot.lane.b32.xlu1 %v1146_v18, %s3816_s19  ;;  %1223 = vrot.lane.b32.xlu0 %v1144_v20, %s3816_s19 }
 0x179   : > { %v1198_v8 = vpop.permute.xlu1 %1197  ;;  %v1196_v10 = vpop.permute.xlu0 %1195 }
 0x17a   : > { %v1499_v32 = vsel %vm703_vm2, %v4072_v44, %v1198_v8  ;;  %v1498_v33 = vsel %vm703_vm2, %v4077_v52, %v1196_v10  ;;  %v1385_v44 = vsel %vm1295_vm7, %v1382_v30, %v1384_v22 }
 0x17b   : > { %1424 = vrot.lane.b32.xlu1 %v1345_v12, %s3817_s20  ;;  %1422 = vrot.lane.b32.xlu0 %v1343_v19, %s3817_s20 }
 0x17d   : > { %v1397_v34 = vpop.permute.xlu1 %1396  ;;  %v1395_v35 = vpop.permute.xlu0 %1394 }
 0x17e   : > { %v4417_v40 = vsel %vm1530_vm8, %v1499_v32, %v1397_v34  ;;  %v4420_v41 = vsel %vm1530_vm8, %v1498_v33, %v1395_v35 }
 0x17f   : > { %1257 = vrot.lane.b32.xlu1 %v1186_v11, %s3816_s19  ;;  %1255 = vrot.lane.b32.xlu0 %v1184_v29, %s3816_s19  ;;  %v3111_v11 = vld [vmem:[%s4991_s3 + $0x20] sm:$0xff]  ;;  %v3112_v29 = vld [vmem:[%s4991_s3 + $0x28] sm:$0xf] }
 0x180   : > { %3435 = vmatprep.mubr.msk.f32.mxu0 %vm1572_vm9, %v4420_v41 }
 0x181   : > { %3436 = vmatmul.mubr.msk.f32.gmra.mrb[34].mxu0 %vm1572_vm9, %v4417_v40  ;;  %v1202_v52 = vpop.permute.xlu1 %1201  ;;  %v1200_v50 = vpop.permute.xlu0 %1199 }
 0x182   : > { %v1501_v54 = vsel %vm703_vm2, %v4101_v17, %v1202_v52  ;;  %v1500_v55 = vsel %vm703_vm2, %v4107_v24, %v1200_v50 }
 0x183   : > { %1456 = vrot.lane.b32.xlu1 %v1385_v44, %s3817_s20  ;;  %1454 = vrot.lane.b32.xlu0 %v1383_v42, %s3817_s20  ;;  %s4852_s20 = scalar_lea.vmem %s4995_s7, %s3183_s9 }
 0x185   : > { %v1401_v56 = vpop.permute.xlu1 %1400  ;;  %v1399_v58 = vpop.permute.xlu0 %1398 }
 0x186   : > { %v4437_v18 = vsel %vm1530_vm8, %v1501_v54, %v1401_v56  ;;  %v4440_v20 = vsel %vm1530_vm8, %v1500_v55, %v1399_v58 }
 0x187   : > { %3438 = vmatprep.mubr.msk.f32.mxu0 %vm1572_vm9, %v4440_v20 }
 0x188   : > { %3439 = vmatmul.mubr.msk.f32.gmra.mrb[36].mxu0 %vm1572_vm9, %v4437_v18 }
 0x189   : > { %v1206_v4 = vpop.permute.xlu1 %1205  ;;  %v1204_v3 = vpop.permute.xlu0 %1203 }
 0x18a   : > { %v1503_v17 = vsel %vm703_vm2, %v4127_v48, %v1206_v4  ;;  %v1502_v24 = vsel %vm703_vm2, %v4133_v53, %v1204_v3 }
 0x18d   : > { %v1405_v7 = vpop.permute.xlu1 %1404  ;;  %v1403_v8 = vpop.permute.xlu0 %1402 }
 0x18e   : > { %v4451_v10 = vsel %vm1530_vm8, %v1503_v17, %v1405_v7  ;;  %v4454_v12 = vsel %vm1530_vm8, %v1502_v24, %v1403_v8 }
 0x18f   : > { %3441 = vmatprep.mubr.msk.f32.mxu0 %vm1572_vm9, %v4454_v12 }
 0x190   : > { %3442 = vmatmul.mubr.msk.f32.gmra.mrb[38].mxu0 %vm1572_vm9, %v4451_v10 }
 0x191   : > { %v1427_v19 = vpop.permute.xlu1 %1426  ;;  %v1228_v22 = vpop.permute.xlu0 %1227 }
 0x192   : > { %v1514_v48 = vsel %vm703_vm2, %v4154_v13, %v1228_v22  ;;  %v4475_v13 = vpack.c.bf16 %v3112_v29, %v3111_v11 }
 0x193   : > { %v4463_v53 = vsel %vm1530_vm8, %v1514_v48, %v1427_v19 }
 0x194   : > { %3459 = vmatprep.mubr.msk.f32.mxu1 %vm1572_vm9, %v4463_v53 }
 0x195   : > { %v1429_v30 = vpop.permute.xlu1 %1428  ;;  %v1230_v31 = vpop.permute.xlu0 %1229 }
 0x196   : > { %v1515_v32 = vsel %vm703_vm2, %v4156_v14, %v1230_v31 }
 0x197   : > { %v4478_v33 = vsel %vm1530_vm8, %v1515_v32, %v1429_v30 }
 0x198   : > { %3460 = vmatmul.mubr.msk.f32.vlgmr.msra.gmra.mrb[4].mxu1 %vm1572_vm9, %v4478_v33 }
 0x199   : > { %v1234_v34 = vpop.permute.xlu1 %1233  ;;  %v1232_v35 = vpop.permute.xlu0 %1231  ;;  %3657 = vmatpush3.bf16.msk.msra.mxu1 %vm4017_vm5, %v4231_v38 }
 0x19a   : > { %3660 = vmatprep.subr.msk.bf16.mxu1 %vm4017_vm5, %v4475_v13  ;;  %v1517_v14 = vsel %vm703_vm2, %v4174_v37, %v1234_v34  ;;  %v1516_v44 = vsel %vm703_vm2, %v4176_v39, %v1232_v35 }
 0x19d   : > { %v1433_v42 = vpop.permute.xlu1 %1432  ;;  %v1431_v52 = vpop.permute.xlu0 %1430 }
 0x19e   : > { %v4493_v50 = vsel %vm1530_vm8, %v1517_v14, %v1433_v42  ;;  %v4496_v54 = vsel %vm1530_vm8, %v1516_v44, %v1431_v52 }
 0x19f   : > { %3462 = vmatprep.mubr.msk.f32.mxu1 %vm1572_vm9, %v4496_v54 }
 0x1a0   : > { %3463 = vmatmul.mubr.msk.f32.gmra.mrb[6].mxu1 %vm1572_vm9, %v4493_v50 }
 0x1a1   : > { %v1238_v38 = vpop.permute.xlu1 %1237  ;;  %v1236_v55 = vpop.permute.xlu0 %1235 }
 0x1a2   : > { %v1519_v37 = vsel %vm703_vm2, %v4196_v5, %v1238_v38  ;;  %v1518_v39 = vsel %vm703_vm2, %v4198_v6, %v1236_v55 }
 0x1a5   : > { %v1437_v56 = vpop.permute.xlu1 %1436  ;;  %v1435_v58 = vpop.permute.xlu0 %1434 }
 0x1a6   : > { %v4507_v4 = vsel %vm1530_vm8, %v1519_v37, %v1437_v56  ;;  %v4510_v3 = vsel %vm1530_vm8, %v1518_v39, %v1435_v58 }
 0x1a7   : > { %3465 = vmatprep.mubr.msk.f32.mxu1 %vm1572_vm9, %v4510_v3 }
 0x1a8   : > { %3466 = vmatmul.mubr.msk.f32.gmra.mrb[8].mxu1 %vm1572_vm9, %v4507_v4 }
 0x1a9   : > { %v1242_v17 = vpop.permute.xlu1 %1241  ;;  %v1240_v24 = vpop.permute.xlu0 %1239 }
 0x1aa   : > { %v1521_v5 = vsel %vm703_vm2, %v4215_v25, %v1242_v17  ;;  %v1520_v6 = vsel %vm703_vm2, %v4217_v27, %v1240_v24 }
 0x1ad   : > { %v1441_v7 = vpop.permute.xlu1 %1440  ;;  %v1439_v8 = vpop.permute.xlu0 %1438 }
 0x1ae   : > { %v4521_v19 = vsel %vm1530_vm8, %v1521_v5, %v1441_v7  ;;  %v4524_v22 = vsel %vm1530_vm8, %v1520_v6, %v1439_v8 }
 0x1af   : > { %3468 = vmatprep.mubr.msk.f32.mxu1 %vm1572_vm9, %v4524_v22 }
 0x1b0   : > { %3469 = vmatmul.mubr.msk.f32.gmra.mrb[10].mxu1 %vm1572_vm9, %v4521_v19 }
 0x1b1   : > { %v1246_v48 = vpop.permute.xlu1 %1245  ;;  %v1244_v11 = vpop.permute.xlu0 %1243 }
 0x1b2   : > { %v1523_v25 = vsel %vm703_vm2, %v4242_v45, %v1246_v48  ;;  %v1522_v27 = vsel %vm703_vm2, %v4244_v47, %v1244_v11 }
 0x1b5   : > { %v1445_v29 = vpop.permute.xlu1 %1444  ;;  %v1443_v30 = vpop.permute.xlu0 %1442 }
 0x1b6   : > { %v4535_v31 = vsel %vm1530_vm8, %v1523_v25, %v1445_v29  ;;  %v4538_v32 = vsel %vm1530_vm8, %v1522_v27, %v1443_v30 }
 0x1b7   : > { %3471 = vmatprep.mubr.msk.f32.mxu1 %vm1572_vm9, %v4538_v32 }
 0x1b8   : > { %3472 = vmatmul.mubr.msk.f32.gmra.mrb[12].mxu1 %vm1572_vm9, %v4535_v31 }
 0x1b9   : > { %v1250_v34 = vpop.permute.xlu1 %1249  ;;  %v1248_v35 = vpop.permute.xlu0 %1247 }
 0x1ba   : > { %v1525_v45 = vsel %vm703_vm2, %v4258_v62, %v1250_v34  ;;  %v1524_v47 = vsel %vm703_vm2, %v4260_v0, %v1248_v35 }
 0x1bd   : > { %v1449_v14 = vpop.permute.xlu1 %1448  ;;  %v1447_v44 = vpop.permute.xlu0 %1446 }
 0x1be   : > { %v4549_v42 = vsel %vm1530_vm8, %v1525_v45, %v1449_v14  ;;  %v4552_v52 = vsel %vm1530_vm8, %v1524_v47, %v1447_v44 }
 0x1bf   : > { %3474 = vmatprep.mubr.msk.f32.mxu1 %vm1572_vm9, %v4552_v52 }
 0x1c0   : > { %3475 = vmatmul.mubr.msk.f32.gmra.mrb[14].mxu1 %vm1572_vm9, %v4549_v42 }
 0x1c1   : > { %v1254_v38 = vpop.permute.xlu1 %1253  ;;  %v1252_v55 = vpop.permute.xlu0 %1251 }
 0x1c2   : > { %v1527_v62 = vsel %vm703_vm2, %v4274_v16, %v1254_v38  ;;  %v1526_v0 = vsel %vm703_vm2, %v4276_v21, %v1252_v55 }
 0x1c5   : > { %v1453_v37 = vpop.permute.xlu1 %1452  ;;  %v1451_v39 = vpop.permute.xlu0 %1450 }
 0x1c6   : > { %v4563_v56 = vsel %vm1530_vm8, %v1527_v62, %v1453_v37  ;;  %v4566_v58 = vsel %vm1530_vm8, %v1526_v0, %v1451_v39 }
 0x1c7   : > { %3477 = vmatprep.mubr.msk.f32.mxu1 %vm1572_vm9, %v4566_v58 }
 0x1c8   : > { %3478 = vmatmul.mubr.msk.f32.gmra.mrb[16].mxu1 %vm1572_vm9, %v4563_v56 }
 0x1c9   : > { %v1210_v17 = vpop.permute.xlu1 %1209  ;;  %3484 = vmatprep.mubr.msk.f32.mxu1 %vm1572_vm9, %v4396_v1  ;;  %v1208_v16 = vpop.permute.xlu0 %1207 }
 0x1ca   : > { %v1505_v21 = vsel %vm703_vm2, %v4294_v43, %v1210_v17  ;;  %v1504_v24 = vsel %vm703_vm2, %v4296_v46, %v1208_v16 }
 0x1cc   : > { %3485 = vmatmul.mubr.msk.f32.vlgmr.msra.gmra.mrb[18].mxu1 %vm1572_vm9, %v4393_v61 }
 0x1cd   : > { %3663 = vmatpush3.bf16.msk.msra.mxu1 %vm4017_vm5, %v4475_v13  ;;  %v1409_v5 = vpop.permute.xlu1 %1408  ;;  %3487 = vmatprep.mubr.msk.f32.mxu1 %vm1572_vm9, %v4362_v15  ;;  %v1407_v6 = vpop.permute.xlu0 %1406 }
 0x1ce   : > { %v4586_v1 = vsel %vm1530_vm8, %v1505_v21, %v1409_v5  ;;  %v4589_v61 = vsel %vm1530_vm8, %v1504_v24, %v1407_v6  ;;  %v4767_v5 = vld [vmem:[%s4992_s4] ss:$0 sm:$0xff] }
 0x1cf   : > { %3444 = vmatprep.mubr.msk.f32.mxu0 %vm1572_vm9, %v4589_v61 }
 0x1d0   : > { %3445 = vmatmul.mubr.msk.f32.gmra.mrb[40].mxu0 %vm1572_vm9, %v4586_v1  ;;  %3488 = vmatmul.mubr.msk.f32.gmra.mrb[20].mxu1 %vm1572_vm9, %v4359_v36 }
 0x1d1   : > { %v1214_v59 = vpop.permute.xlu1 %1213  ;;  %3490 = vmatprep.mubr.msk.f32.mxu1 %vm1572_vm9, %v4420_v41  ;;  %v1212_v43 = vpop.permute.xlu0 %1211 }
 0x1d2   : > { %v1507_v46 = vsel %vm703_vm2, %v4310_v63, %v1214_v59  ;;  %v1506_v15 = vsel %vm703_vm2, %v4312_v2, %v1212_v43 }
 0x1d4   : > { %3491 = vmatmul.mubr.msk.f32.gmra.mrb[22].mxu1 %vm1572_vm9, %v4417_v40 }
 0x1d5   : > { %v1413_v13 = vpop.permute.xlu1 %1412  ;;  %3493 = vmatprep.mubr.msk.f32.mxu1 %vm1572_vm9, %v4440_v20  ;;  %v1411_v7 = vpop.permute.xlu0 %1410 }
 0x1d6   : > { %v4608_v36 = vsel %vm1530_vm8, %v1507_v46, %v1413_v13  ;;  %v4611_v8 = vsel %vm1530_vm8, %v1506_v15, %v1411_v7 }
 0x1d7   : > { %3447 = vmatprep.mubr.msk.f32.mxu0 %vm1572_vm9, %v4611_v8 }
 0x1d8   : > { %3448 = vmatmul.mubr.msk.f32.gmra.mrb[42].mxu0 %vm1572_vm9, %v4608_v36  ;;  %3494 = vmatmul.mubr.msk.f32.gmra.mrb[24].mxu1 %vm1572_vm9, %v4437_v18 }
 0x1d9   : > { %v1218_v63 = vpop.permute.xlu1 %1217  ;;  %3496 = vmatprep.mubr.msk.f32.mxu1 %vm1572_vm9, %v4454_v12  ;;  %v1216_v2 = vpop.permute.xlu0 %1215 }
 0x1da   : > { %v1509_v48 = vsel %vm703_vm2, %v4326_v23, %v1218_v63  ;;  %v1508_v11 = vsel %vm703_vm2, %v4328_v28, %v1216_v2 }
 0x1dc   : > { %3497 = vmatmul.mubr.msk.f32.gmra.mrb[26].mxu1 %vm1572_vm9, %v4451_v10 }
 0x1dd   : > { %v1417_v25 = vpop.permute.xlu1 %1416  ;;  %3499 = vmatprep.mubr.msk.f32.mxu1 %vm1572_vm9, %v4589_v61  ;;  %v1415_v27 = vpop.permute.xlu0 %1414 }
 0x1de   : > { %v1546_v29 = vsel %vm1530_vm8, %v1509_v48, %v1417_v25  ;;  %v1545_v30 = vsel %vm1530_vm8, %v1508_v11, %v1415_v27 }
 0x1df   : > { %3450 = vmatprep.mubr.msk.f32.mxu0 %vm1572_vm9, %v1545_v30 }
 0x1e0   : > { %3451 = vmatmul.mubr.msk.f32.gmra.mrb[44].mxu0 %vm1572_vm9, %v1546_v29  ;;  %3500 = vmatmul.mubr.msk.f32.gmra.mrb[28].mxu1 %vm1572_vm9, %v4586_v1 }
 0x1e1   : > { %v1222_v23 = vpop.permute.xlu1 %1221  ;;  %3502 = vmatprep.mubr.msk.f32.mxu1 %vm1572_vm9, %v4611_v8  ;;  %v1220_v28 = vpop.permute.xlu0 %1219 }
 0x1e2   : > { %v1511_v34 = vsel %vm703_vm2, %v4342_v49, %v1222_v23  ;;  %v1510_v35 = vsel %vm703_vm2, %v4344_v51, %v1220_v28 }
 0x1e4   : > { %3503 = vmatmul.mubr.msk.f32.gmra.mrb[30].mxu1 %vm1572_vm9, %v4608_v36 }
 0x1e5   : > { %v1421_v45 = vpop.permute.xlu1 %1420  ;;  %3505 = vmatprep.mubr.msk.f32.mxu1 %vm1572_vm9, %v1545_v30  ;;  %v1419_v47 = vpop.permute.xlu0 %1418 }
 0x1e6   : > { %v1548_v14 = vsel %vm1530_vm8, %v1511_v34, %v1421_v45  ;;  %v1547_v44 = vsel %vm1530_vm8, %v1510_v35, %v1419_v47 }
 0x1e7   : > { %3453 = vmatprep.mubr.msk.f32.mxu0 %vm1572_vm9, %v1547_v44 }
 0x1e8   : > { %3454 = vmatmul.mubr.msk.f32.gmra.mrb[46].mxu0 %vm1572_vm9, %v1548_v14  ;;  %3506 = vmatmul.mubr.msk.f32.gmra.mrb[32].mxu1 %vm1572_vm9, %v1546_v29 }
 0x1e9   : > { %v1226_v38 = vpop.permute.xlu1 %1225  ;;  %3508 = vmatprep.mubr.msk.f32.mxu1 %vm1572_vm9, %v1547_v44  ;;  %v1224_v49 = vpop.permute.xlu0 %1223 }
 0x1ea   : > { %v1513_v51 = vsel %vm703_vm2, %v4368_v9, %v1226_v38  ;;  %v1512_v55 = vsel %vm703_vm2, %v4370_v26, %v1224_v49 }
 0x1ec   : > { %3509 = vmatmul.mubr.msk.f32.gmra.mrb[34].mxu1 %vm1572_vm9, %v1548_v14 }
 0x1ed   : > { %v1425_v62 = vpop.permute.xlu1 %1424  ;;  %v1423_v0 = vpop.permute.xlu0 %1422 }
 0x1ee   : > { %v1550_v37 = vsel %vm1530_vm8, %v1513_v51, %v1425_v62  ;;  %v1549_v39 = vsel %vm1530_vm8, %v1512_v55, %v1423_v0 }
 0x1ef   : > { %3456 = vmatprep.mubr.msk.f32.mxu0 %vm1572_vm9, %v1549_v39  ;;  %3511 = vmatprep.mubr.msk.f32.mxu1 %vm1572_vm9, %v1549_v39 }
 0x1f0   : > { %3457 = vmatmul.mubr.msk.f32.gmra.mrb[48].mxu0 %vm1572_vm9, %v1550_v37  ;;  %3512 = vmatmul.mubr.msk.f32.gmra.mrb[4].mxu1 %vm1572_vm9, %v1550_v37 }
 0x1f1   : > { %3514 = vmatprep.mubr.msk.f32.mxu1 %vm1572_vm9, %v4463_v53  ;;  %v1256_v9 = vpop.permute.xlu0 %1255  ;;  %v1258_v26 = vpop.permute.xlu1 %1257 }
 0x1f4   : > { %3515 = vmatmul.mubr.msk.f32.gmra.mrb[6].mxu1 %vm1572_vm9, %v4478_v33 }
 0x1f5   : > { %3517 = vmatprep.mubr.msk.f32.mxu1 %vm1572_vm9, %v4496_v54 }
 0x1f8   : > { %3518 = vmatmul.mubr.msk.f32.gmra.mrb[8].mxu1 %vm1572_vm9, %v4493_v50 }
 0x1f9   : > { %3520 = vmatprep.mubr.msk.f32.mxu1 %vm1572_vm9, %v4510_v3 }
 0x1fc   : > { %3521 = vmatmul.mubr.msk.f32.gmra.mrb[10].mxu1 %vm1572_vm9, %v4507_v4 }
 0x1fd   : > { %3523 = vmatprep.mubr.msk.f32.mxu1 %vm1572_vm9, %v4524_v22 }
 0x200   : > { %3524 = vmatmul.mubr.msk.f32.gmra.mrb[12].mxu1 %vm1572_vm9, %v4521_v19 }
 0x201   : > { %3526 = vmatprep.mubr.msk.f32.mxu1 %vm1572_vm9, %v4538_v32 }
 0x204   : > { %3527 = vmatmul.mubr.msk.f32.gmra.mrb[14].mxu1 %vm1572_vm9, %v4535_v31 }
 0x205   : > { %3529 = vmatprep.mubr.msk.f32.mxu1 %vm1572_vm9, %v4552_v52 }
 0x208   : > { %3530 = vmatmul.mubr.msk.f32.gmra.mrb[16].mxu1 %vm1572_vm9, %v4549_v42 }
 0x209   : > { %3536 = vmatprep.mubr.msk.f32.mxu1 %vm1572_vm9, %v4420_v41  ;;  %v1528_v41 = vsel %vm703_vm2, %v4390_v60, %v1256_v9  ;;  %v1529_v60 = vsel %vm703_vm2, %v4388_v57, %v1258_v26 }
 0x20c   : > { %3537 = vmatmul.mubr.msk.f32.vlgmr.msra.gmra.mrb[18].mxu1 %vm1572_vm9, %v4417_v40  ;;  %v1455_v40 = vpop.permute.xlu0 %1454 }
 0x20d   : > { %3539 = vmatprep.mubr.msk.f32.mxu1 %vm1572_vm9, %v4440_v20  ;;  %v1457_v20 = vpop.permute.xlu1 %1456 }
 0x210   : > { %3540 = vmatmul.mubr.msk.f32.gmra.mrb[20].mxu1 %vm1572_vm9, %v4437_v18  ;;  %v2472_v18 = vld [vmem:[%s4993_s5] sm:$0xf] }
 0x211   : > { %3542 = vmatprep.mubr.msk.f32.mxu1 %vm1572_vm9, %v4454_v12  ;;  %3584 = vmatprep.subr.msk.mxu0 %vm1669_vm3, %v2472_v18 }
 0x212   : > { %3585 = vmatpush3.msk.msra.mxu0 %vm1669_vm3, %v2472_v18 }
 0x214   : > { %3543 = vmatmul.mubr.msk.f32.gmra.mrb[22].mxu1 %vm1572_vm9, %v4451_v10  ;;  %v1565_v10 = vsel %vm1530_vm8, %v1528_v41, %v1455_v40 }
 0x215   : > { %3545 = vmatprep.mubr.msk.f32.mxu1 %vm1572_vm9, %v4589_v61 }
 0x218   : > { %3546 = vmatmul.mubr.msk.f32.gmra.mrb[24].mxu1 %vm1572_vm9, %v4586_v1 }
 0x219   : > { %3548 = vmatprep.mubr.msk.f32.mxu1 %vm1572_vm9, %v4611_v8 }
 0x21c   : > { %3549 = vmatmul.mubr.msk.f32.gmra.mrb[26].mxu1 %vm1572_vm9, %v4608_v36 }
 0x21d   : > { %3551 = vmatprep.mubr.msk.f32.mxu1 %vm1572_vm9, %v1545_v30 }
 0x220   : > { %3552 = vmatmul.mubr.msk.f32.gmra.mrb[28].mxu1 %vm1572_vm9, %v1546_v29 }
 0x221   : > { %3554 = vmatprep.mubr.msk.f32.mxu1 %vm1572_vm9, %v1547_v44 }
 0x224   : > { %3555 = vmatmul.mubr.msk.f32.gmra.mrb[30].mxu1 %vm1572_vm9, %v1548_v14 }
 0x225   : > { %3557 = vmatprep.mubr.msk.f32.mxu1 %vm1572_vm9, %v1549_v39 }
 0x228   : > { %3558 = vmatmul.mubr.msk.f32.gmra.mrb[32].mxu1 %vm1572_vm9, %v1550_v37 }
 0x229   : > { %3560 = vmatprep.mubr.msk.f32.mxu1 %vm1572_vm9, %v4463_v53 }
 0x22c   : > { %3561 = vmatmul.mubr.msk.f32.gmra.mrb[34].mxu1 %vm1572_vm9, %v4478_v33  ;;  %v1566_v33 = vsel %vm1530_vm8, %v1529_v60, %v1457_v20 }
 0x22d   : > { %3563 = vmatprep.mubr.msk.f32.mxu1 %vm1572_vm9, %v4496_v54 }
 0x230   : > { %3564 = vmatmul.mubr.msk.f32.gmra.mrb[4].mxu1 %vm1572_vm9, %v4493_v50 }
 0x231   : > { %3566 = vmatprep.mubr.msk.f32.mxu1 %vm1572_vm9, %v4510_v3 }
 0x234   : > { %3567 = vmatmul.mubr.msk.f32.gmra.mrb[6].mxu1 %vm1572_vm9, %v4507_v4 }
 0x235   : > { %3569 = vmatprep.mubr.msk.f32.mxu1 %vm1572_vm9, %v4524_v22 }
 0x238   : > { %3570 = vmatmul.mubr.msk.f32.gmra.mrb[8].mxu1 %vm1572_vm9, %v4521_v19 }
 0x239   : > { %3572 = vmatprep.mubr.msk.f32.mxu1 %vm1572_vm9, %v4538_v32 }
 0x23c   : > { %3573 = vmatmul.mubr.msk.f32.gmra.mrb[10].mxu1 %vm1572_vm9, %v4535_v31 }
 0x23d   : > { %3575 = vmatprep.mubr.msk.f32.mxu1 %vm1572_vm9, %v4552_v52 }
 0x240   : > { %3576 = vmatmul.mubr.msk.f32.gmra.mrb[12].mxu1 %vm1572_vm9, %v4549_v42 }
 0x241   : > { %3578 = vmatprep.mubr.msk.f32.mxu1 %vm1572_vm9, %v4566_v58 }
 0x244   : > { %v3434_v12 = vpop.f32.mrb[32].mxu0  ;;  %3579 = vmatmul.mubr.msk.f32.gmra.mrb[14].mxu1 %vm1572_vm9, %v4563_v56 }
 0x245   : > { %v1739_v53 = vpop.f32.mrb[33].mxu0  ;;  %3581 = vmatprep.mubr.msk.f32.mxu1 %vm1572_vm9, %v1565_v10 }
 0x248   : > { %3582 = vmatmul.mubr.msk.f32.gmra.mrb[16].mxu1 %vm1572_vm9, %v1566_v33 }
 0x254   : > { %v3437_v50 = vpop.f32.mrb[34].mxu0 }
 0x255   : > { %v1749_v54 = vpop.f32.mrb[35].mxu0 }
 0x25b   : > { %v3440_v4 = vpop.f32.mrb[36].mxu0 }
 0x25c   : > { %v1759_v3 = vpop.f32.mrb[37].mxu0 }
 0x263   : > { %v3443_v19 = vpop.f32.mrb[38].mxu0 }
 0x264   : > { %v1769_v22 = vpop.f32.mrb[39].mxu0 }
 0x2a3   : > { %v3446_v31 = vpop.f32.mrb[40].mxu0 }
 0x2a4   : > { %v1779_v32 = vpop.f32.mrb[41].mxu0 }
 0x2ab   : > { %v3449_v42 = vpop.f32.mrb[42].mxu0 }
 0x2ac   : > { %v1789_v52 = vpop.f32.mrb[43].mxu0 }
 0x2b3   : > { %v4752_v56 = vpop.f32.mrb[44].mxu0 }
 0x2b4   : > { %v4754_v58 = vpop.f32.mrb[45].mxu0 }
 0x2bb   : > { %v4756_v17 = vpop.f32.mrb[46].mxu0 }
 0x2bc   : > { %v4758_v57 = vpop.f32.mrb[47].mxu0 }
 0x2c3   : > { %v4760_v16 = vpop.f32.mrb[48].mxu0 }
 0x2c4   : > { %v4762_v21 = vpop.f32.mrb[49].mxu0 }
 0x2df   : > { %v3538_v24 = vpop.f32.mrb[18].mxu1 }
 0x2e0   : > { %v3666_v6 = vadd.f32 %v3538_v24, %v3434_v12  ;;  %v2210_v1 = vpop.f32.mrb[19].mxu1 }
 0x2e1   : > { %v3667_v61 = vadd.f32 %v2210_v1, %v1739_v53 }
 0x2e2   : > { %v2409_v59 = vadd.f32 %v3666_v6, %v4767_v5 }
 0x2e3   : > { %v2408_v43 = vadd.f32 %v3667_v61, %v4767_v5  ;;  %v3541_v46 = vpop.f32.mrb[20].mxu1 }
 0x2e4   : > { %v3668_v15 = vadd.f32 %v3541_v46, %v3437_v50  ;;  %v2220_v13 = vpop.f32.mrb[21].mxu1  ;;  %v2441_v8 = vmax.f32 %v2409_v59, 0.0 }
 0x2e5   : > { %v2440_v7 = vmax.f32 %v2408_v43, 0.0  ;;  %v3669_v36 = vadd.f32 %v2220_v13, %v1749_v54 }
 0x2e6   : > { %v2411_v63 = vadd.f32 %v3668_v15, %v4767_v5 }
 0x2e7   : > { %v2410_v2 = vadd.f32 %v3669_v36, %v4767_v5  ;;  %v3544_v48 = vpop.f32.mrb[22].mxu1  ;;  %3586 = vmatprep.mubr.msk.f32.mxu0 %vm703_vm2, %v2440_v7 }
 0x2e8   : > { %v3670_v11 = vadd.f32 %v3544_v48, %v3440_v4  ;;  %v2230_v25 = vpop.f32.mrb[23].mxu1  ;;  %3587 = vmatmul.mubr.msk.f32.vlgmr.msra.gmra.mrb[50].mxu0 %vm703_vm2, %v2441_v8  ;;  %v2443_v30 = vmax.f32 %v2411_v63, 0.0 }
 0x2e9   : > { %v2442_v27 = vmax.f32 %v2410_v2, 0.0  ;;  %v3671_v29 = vadd.f32 %v2230_v25, %v1759_v3 }
 0x2ea   : > { %v2413_v23 = vadd.f32 %v3670_v11, %v4767_v5 }
 0x2eb   : > { %v2412_v28 = vadd.f32 %v3671_v29, %v4767_v5  ;;  %v3547_v34 = vpop.f32.mrb[24].mxu1  ;;  %3589 = vmatprep.mubr.msk.f32.mxu0 %vm703_vm2, %v2442_v27 }
 0x2ec   : > { %v3672_v35 = vadd.f32 %v3547_v34, %v3443_v19  ;;  %v2240_v45 = vpop.f32.mrb[25].mxu1  ;;  %3590 = vmatmul.mubr.msk.f32.gmra.mrb[52].mxu0 %vm703_vm2, %v2443_v30  ;;  %v2445_v44 = vmax.f32 %v2413_v23, 0.0 }
 0x2ed   : > { %v2444_v47 = vmax.f32 %v2412_v28, 0.0  ;;  %v3673_v14 = vadd.f32 %v2240_v45, %v1769_v22 }
 0x2ee   : > { %v2415_v38 = vadd.f32 %v3672_v35, %v4767_v5 }
 0x2ef   : > { %v2414_v49 = vadd.f32 %v3673_v14, %v4767_v5  ;;  %v3550_v51 = vpop.f32.mrb[26].mxu1  ;;  %3592 = vmatprep.mubr.msk.f32.mxu0 %vm703_vm2, %v2444_v47 }
 0x2f0   : > { %v3674_v55 = vadd.f32 %v3550_v51, %v3446_v31  ;;  %v2250_v62 = vpop.f32.mrb[27].mxu1  ;;  %3593 = vmatmul.mubr.msk.f32.gmra.mrb[54].mxu0 %vm703_vm2, %v2445_v44  ;;  %v2447_v39 = vmax.f32 %v2415_v38, 0.0 }
 0x2f1   : > { %v2446_v0 = vmax.f32 %v2414_v49, 0.0  ;;  %v3675_v37 = vadd.f32 %v2250_v62, %v1779_v32 }
 0x2f2   : > { %v2417_v9 = vadd.f32 %v3674_v55, %v4767_v5 }
 0x2f3   : > { %v2416_v26 = vadd.f32 %v3675_v37, %v4767_v5  ;;  %v3553_v40 = vpop.f32.mrb[28].mxu1  ;;  %3595 = vmatprep.mubr.msk.f32.mxu0 %vm703_vm2, %v2446_v0 }
 0x2f4   : > { %v3676_v41 = vadd.f32 %v3553_v40, %v3449_v42  ;;  %v2260_v18 = vpop.f32.mrb[29].mxu1  ;;  %3596 = vmatmul.mubr.msk.f32.gmra.mrb[56].mxu0 %vm703_vm2, %v2447_v39  ;;  %v2449_v12 = vmax.f32 %v2417_v9, 0.0 }
 0x2f5   : > { %v2448_v20 = vmax.f32 %v2416_v26, 0.0  ;;  %v3677_v10 = vadd.f32 %v2260_v18, %v1789_v52 }
 0x2f6   : > { %v2419_v53 = vadd.f32 %v3676_v41, %v4767_v5 }
 0x2f7   : > { %v2418_v60 = vadd.f32 %v3677_v10, %v4767_v5  ;;  %v3556_v33 = vpop.f32.mrb[30].mxu1  ;;  %3598 = vmatprep.mubr.msk.f32.mxu0 %vm703_vm2, %v2448_v20 }
 0x2f8   : > { %v3678_v50 = vadd.f32 %v3556_v33, %v4752_v56  ;;  %v2270_v54 = vpop.f32.mrb[31].mxu1  ;;  %3599 = vmatmul.mubr.msk.f32.gmra.mrb[58].mxu0 %vm703_vm2, %v2449_v12  ;;  %v2451_v19 = vmax.f32 %v2419_v53, 0.0 }
 0x2f9   : > { %v2450_v4 = vmax.f32 %v2418_v60, 0.0  ;;  %v3679_v3 = vadd.f32 %v2270_v54, %v4754_v58 }
 0x2fa   : > { %v2421_v22 = vadd.f32 %v3678_v50, %v4767_v5 }
 0x2fb   : > { %v2420_v31 = vadd.f32 %v3679_v3, %v4767_v5  ;;  %v3559_v32 = vpop.f32.mrb[32].mxu1  ;;  %3601 = vmatprep.mubr.msk.f32.mxu0 %vm703_vm2, %v2450_v4 }
 0x2fc   : > { %v3680_v42 = vadd.f32 %v3559_v32, %v4756_v17  ;;  %v2280_v52 = vpop.f32.mrb[33].mxu1  ;;  %3602 = vmatmul.mubr.msk.f32.gmra.mrb[60].mxu0 %vm703_vm2, %v2451_v19  ;;  %v2453_v6 = vmax.f32 %v2421_v22, 0.0  ;;  %v4842_v19 = vld [vmem:[%s4994_s6] ss:$0 sm:$0xff] }
 0x2fd   : > { %v2452_v56 = vmax.f32 %v2420_v31, 0.0  ;;  %v3681_v24 = vadd.f32 %v2280_v52, %v4758_v57 }
 0x2fe   : > { %v2423_v1 = vadd.f32 %v3680_v42, %v4767_v5  ;;  %v3758_v42 = vld [vmem:[%s3890_s12 + $0x8] sm:$0xff] }
 0x2ff   : > { %v2422_v58 = vadd.f32 %v3681_v24, %v4767_v5  ;;  %v3562_v61 = vpop.f32.mrb[34].mxu1  ;;  %3604 = vmatprep.mubr.msk.f32.mxu0 %vm703_vm2, %v2452_v56  ;;  %v3759_v56 = vld [vmem:[%s3890_s12] sm:$0xff] }
 0x300   : > { %v3682_v59 = vadd.f32 %v3562_v61, %v4760_v16  ;;  %v2290_v43 = vpop.f32.mrb[35].mxu1  ;;  %3605 = vmatmul.mubr.msk.f32.gmra.mrb[62].mxu0 %vm703_vm2, %v2453_v6  ;;  %v2455_v15 = vmax.f32 %v2423_v1, 0.0 }
 0x301   : > { %v2454_v17 = vmax.f32 %v2422_v58, 0.0  ;;  %v3683_v46 = vadd.f32 %v2290_v43, %v4762_v21 }
 0x302   : > { %v2425_v13 = vadd.f32 %v3682_v59, %v4767_v5 }
 0x303   : > { %v2424_v57 = vadd.f32 %v3683_v46, %v4767_v5  ;;  %v3565_v7 = vpop.f32.mrb[4].mxu1  ;;  %3607 = vmatprep.mubr.msk.f32.mxu0 %vm703_vm2, %v2454_v17  ;;  %v3760_v17 = vld [vmem:[%s3890_s12 + $0x18] sm:$0xff] }
 0x304   : > { %v2300_v36 = vpop.f32.mrb[5].mxu1  ;;  %3608 = vmatmul.mubr.msk.f32.gmra.mrb[64].mxu0 %vm703_vm2, %v2455_v15  ;;  %v2457_v63 = vmax.f32 %v2425_v13, 0.0  ;;  %v2427_v2 = vadd.f32 %v3565_v7, %v4767_v5  ;;  %v3761_v15 = vld [vmem:[%s3890_s12 + $0x10] sm:$0xff] }
 0x305   : > { %v2456_v8 = vmax.f32 %v2424_v57, 0.0  ;;  %v2426_v16 = vadd.f32 %v4767_v5, %v2300_v36 }
 0x306   : > { %v2459_v27 = vmax.f32 %v2427_v2, 0.0  ;;  %v3762_v2 = vld [vmem:[%s3890_s12 + $0x28] sm:$0xff] }
 0x307   : > { %v2458_v48 = vmax.f32 %v2426_v16, 0.0  ;;  %v3568_v11 = vpop.f32.mrb[6].mxu1  ;;  %3610 = vmatprep.mubr.msk.f32.mxu0 %vm703_vm2, %v2456_v8 }
 0x308   : > { %v2310_v21 = vpop.f32.mrb[7].mxu1  ;;  %3611 = vmatmul.mubr.msk.f32.gmra.mrb[66].mxu0 %vm703_vm2, %v2457_v63  ;;  %v2429_v29 = vadd.f32 %v3568_v11, %v4767_v5  ;;  %v3763_v11 = vld [vmem:[%s3890_s12 + $0x20] sm:$0xff] }
 0x309   : > { %v2428_v25 = vadd.f32 %v4767_v5, %v2310_v21  ;;  %3613 = vmatprep.mubr.msk.f32.mxu0 %vm703_vm2, %v2458_v48 }
 0x30a   : > { %v2461_v35 = vmax.f32 %v2429_v29, 0.0 }
 0x30b   : > { %v2460_v30 = vmax.f32 %v2428_v25, 0.0  ;;  %v3571_v23 = vpop.f32.mrb[8].mxu1 }
 0x30c   : > { %v2320_v28 = vpop.f32.mrb[9].mxu1  ;;  %3614 = vmatmul.mubr.msk.f32.gmra.mrb[68].mxu0 %vm703_vm2, %v2459_v27  ;;  %v2431_v45 = vadd.f32 %v3571_v23, %v4767_v5 }
 0x30d   : > { %v2430_v34 = vadd.f32 %v4767_v5, %v2320_v28  ;;  %3616 = vmatprep.mubr.msk.f32.mxu0 %vm703_vm2, %v2460_v30 }
 0x30e   : > { %v2463_v49 = vmax.f32 %v2431_v45, 0.0  ;;  %v3765_v45 = vld [vmem:[%s3890_s12 + $0x30] sm:$0xff] }
 0x30f   : > { %v2462_v47 = vmax.f32 %v2430_v34, 0.0  ;;  %v3574_v14 = vpop.f32.mrb[10].mxu1  ;;  %v3764_v34 = vld [vmem:[%s3890_s12 + $0x38] sm:$0xff] }
 0x310   : > { %v2330_v44 = vpop.f32.mrb[11].mxu1  ;;  %3617 = vmatmul.mubr.msk.f32.gmra.mrb[70].mxu0 %vm703_vm2, %v2461_v35  ;;  %v2433_v51 = vadd.f32 %v3574_v14, %v4767_v5 }
 0x311   : > { %v2432_v38 = vadd.f32 %v4767_v5, %v2330_v44  ;;  %3619 = vmatprep.mubr.msk.f32.mxu0 %vm703_vm2, %v2462_v47 }
 0x312   : > { %v2465_v39 = vmax.f32 %v2433_v51, 0.0 }
 0x313   : > { %v2464_v55 = vmax.f32 %v2432_v38, 0.0  ;;  %v3577_v62 = vpop.f32.mrb[12].mxu1 }
 0x314   : > { %v2340_v0 = vpop.f32.mrb[13].mxu1  ;;  %3620 = vmatmul.mubr.msk.f32.gmra.mrb[72].mxu0 %vm703_vm2, %v2463_v49  ;;  %v2435_v9 = vadd.f32 %v3577_v62, %v4767_v5  ;;  %v3766_v62 = vld [vmem:[%s3890_s12 + $0x48] sm:$0xff] }
 0x315   : > { %v2434_v37 = vadd.f32 %v4767_v5, %v2340_v0  ;;  %3622 = vmatprep.mubr.msk.f32.mxu0 %vm703_vm2, %v2464_v55 }
 0x316   : > { %v2467_v20 = vmax.f32 %v2435_v9, 0.0 }
 0x317   : > { %v2466_v26 = vmax.f32 %v2434_v37, 0.0  ;;  %v3580_v40 = vpop.f32.mrb[14].mxu1  ;;  %v3767_v37 = vld [vmem:[%s3890_s12 + $0x40] sm:$0xff] }
 0x318   : > { %v2350_v41 = vpop.f32.mrb[15].mxu1  ;;  %3623 = vmatmul.mubr.msk.f32.gmra.mrb[74].mxu0 %vm703_vm2, %v2465_v39  ;;  %v2437_v10 = vadd.f32 %v3580_v40, %v4767_v5 }
 0x319   : > { %v2436_v18 = vadd.f32 %v4767_v5, %v2350_v41  ;;  %3625 = vmatprep.mubr.msk.f32.mxu0 %vm703_vm2, %v2466_v26 }
 0x31a   : > { %v2469_v50 = vmax.f32 %v2437_v10, 0.0  ;;  %v3768_v10 = vld [vmem:[%s3890_s12 + $0x58] sm:$0xff] }
 0x31b   : > { %v2468_v12 = vmax.f32 %v2436_v18, 0.0  ;;  %v3583_v53 = vpop.f32.mrb[16].mxu1 }
 0x31c   : > { %v2360_v60 = vpop.f32.mrb[17].mxu1  ;;  %3626 = vmatmul.mubr.msk.f32.gmra.mrb[76].mxu0 %vm703_vm2, %v2467_v20  ;;  %v2439_v54 = vadd.f32 %v3583_v53, %v4767_v5  ;;  %v3769_v53 = vld [vmem:[%s3890_s12 + $0x50] sm:$0xff] }
 0x31d   : > { %v2438_v33 = vadd.f32 %v4767_v5, %v2360_v60  ;;  %3628 = vmatprep.mubr.msk.f32.mxu0 %vm703_vm2, %v2468_v12 }
 0x31e   : > { %v2471_v3 = vmax.f32 %v2439_v54, 0.0 }
 0x31f   : > { %v2470_v4 = vmax.f32 %v2438_v33, 0.0 }
 0x320   : > { %3629 = vmatmul.mubr.msk.f32.gmra.mrb[78].mxu0 %vm703_vm2, %v2469_v50 }
 0x321   : > { %3631 = vmatprep.mubr.msk.f32.mxu0 %vm703_vm2, %v2470_v4 }
 0x324   : > { %3632 = vmatmul.mubr.msk.f32.gmra.mrb[80].mxu0 %vm703_vm2, %v2471_v3 }
 0x3bb   : > { %v3588_v22 = vpop.f32.mrb[50].mxu0 }
 0x3bc   : > { %v2651_v31 = vadd.f32 %v3588_v22, %v4842_v19  ;;  %v2645_v32 = vpop.f32.mrb[51].mxu0 }
 0x3bd   : > { %v2646_v5 = vadd.f32 %v4842_v19, %v2645_v32 }
 0x3be   : > { %v2805_v52 = vadd.f32 %v3758_v42, %v2651_v31  ;;  %v3770_v31 = vld [vmem:[%s3890_s12 + $0x68] sm:$0xff] }
 0x3bf   : > { %v2804_v24 = vadd.f32 %v3759_v56, %v2646_v5  ;;  %v3591_v6 = vpop.f32.mrb[52].mxu0  ;;  %v3771_v5 = vld [vmem:[%s3890_s12 + $0x60] sm:$0xff] }
 0x3c0   : > { %v2837_v1 = vmax.f32 %v2805_v52, 0.0  ;;  %v2661_v58 = vadd.f32 %v3591_v6, %v4842_v19  ;;  %v2655_v61 = vpop.f32.mrb[53].mxu0 }
 0x3c1   : > { %v2836_v59 = vmax.f32 %v2804_v24, 0.0  ;;  %v2656_v43 = vadd.f32 %v4842_v19, %v2655_v61  ;;  %v3772_v61 = vld [vmem:[%s3890_s12 + $0x78] sm:$0xff] }
 0x3c2   : > { %2869 = vst.msk [vmem:[%s4852_s20 + $0x8] sm:$0xff] %vm348_vm0, %v2837_v1  ;;  %v2807_v46 = vadd.f32 %v3760_v17, %v2661_v58 }
 0x3c3   : > { %2868 = vst.msk [vmem:[%s4852_s20] sm:$0xff] %vm348_vm0, %v2836_v59  ;;  %v2806_v13 = vadd.f32 %v3761_v15, %v2656_v43  ;;  %v3594_v57 = vpop.f32.mrb[54].mxu0  ;;  %v3773_v43 = vld [vmem:[%s3890_s12 + $0x70] sm:$0xff] }
 0x3c4   : > { %v2839_v7 = vmax.f32 %v2807_v46, 0.0  ;;  %v2671_v36 = vadd.f32 %v3594_v57, %v4842_v19  ;;  %v2665_v8 = vpop.f32.mrb[55].mxu0 }
 0x3c5   : > { %v2838_v16 = vmax.f32 %v2806_v13, 0.0  ;;  %v2666_v63 = vadd.f32 %v4842_v19, %v2665_v8  ;;  %v3774_v8 = vld [vmem:[%s3890_s12 + $0x88] sm:$0xff] }
 0x3c6   : > { %2871 = vst.msk [vmem:[%s4852_s20 + $0x18] sm:$0xff] %vm348_vm0, %v2839_v7  ;;  %v2809_v48 = vadd.f32 %v3762_v2, %v2671_v36 }
 0x3c7   : > { %2870 = vst.msk [vmem:[%s4852_s20 + $0x10] sm:$0xff] %vm348_vm0, %v2838_v16  ;;  %v2808_v21 = vadd.f32 %v3763_v11, %v2666_v63  ;;  %v3597_v25 = vpop.f32.mrb[56].mxu0  ;;  %v3775_v63 = vld [vmem:[%s3890_s12 + $0x80] sm:$0xff] }
 0x3c8   : > { %v2841_v27 = vmax.f32 %v2809_v48, 0.0  ;;  %v2681_v29 = vadd.f32 %v3597_v25, %v4842_v19  ;;  %v2675_v30 = vpop.f32.mrb[57].mxu0 }
 0x3c9   : > { %v2840_v23 = vmax.f32 %v2808_v21, 0.0  ;;  %v2676_v28 = vadd.f32 %v4842_v19, %v2675_v30  ;;  %v3776_v30 = vld [vmem:[%s3890_s12 + $0x98] sm:$0xff] }
 0x3ca   : > { %2873 = vst.msk [vmem:[%s4852_s20 + $0x28] sm:$0xff] %vm348_vm0, %v2841_v27  ;;  %v2811_v35 = vadd.f32 %v3764_v34, %v2681_v29 }
 0x3cb   : > { %2872 = vst.msk [vmem:[%s4852_s20 + $0x20] sm:$0xff] %vm348_vm0, %v2840_v23  ;;  %v2810_v47 = vadd.f32 %v3765_v45, %v2676_v28  ;;  %v3600_v14 = vpop.f32.mrb[58].mxu0  ;;  %v3777_v28 = vld [vmem:[%s3890_s12 + $0x90] sm:$0xff] }
 0x3cc   : > { %v2843_v44 = vmax.f32 %v2811_v35, 0.0  ;;  %v2691_v38 = vadd.f32 %v3600_v14, %v4842_v19  ;;  %v2685_v49 = vpop.f32.mrb[59].mxu0 }
 0x3cd   : > { %v2842_v51 = vmax.f32 %v2810_v47, 0.0  ;;  %v2686_v55 = vadd.f32 %v4842_v19, %v2685_v49  ;;  %v3778_v49 = vld [vmem:[%s3890_s12 + $0xa8] sm:$0xff] }
 0x3ce   : > { %2875 = vst.msk [vmem:[%s4852_s20 + $0x38] sm:$0xff] %vm348_vm0, %v2843_v44  ;;  %v2813_v0 = vadd.f32 %v3766_v62, %v2691_v38 }
 0x3cf   : > { %2874 = vst.msk [vmem:[%s4852_s20 + $0x30] sm:$0xff] %vm348_vm0, %v2842_v51  ;;  %v2812_v39 = vadd.f32 %v3767_v37, %v2686_v55  ;;  %v3603_v9 = vpop.f32.mrb[60].mxu0  ;;  %v3779_v55 = vld [vmem:[%s3890_s12 + $0xa0] sm:$0xff] }
 0x3d0   : > { %v2845_v26 = vmax.f32 %v2813_v0, 0.0  ;;  %v2701_v40 = vadd.f32 %v3603_v9, %v4842_v19  ;;  %v2695_v41 = vpop.f32.mrb[61].mxu0 }
 0x3d1   : > { %v2844_v18 = vmax.f32 %v2812_v39, 0.0  ;;  %v2696_v20 = vadd.f32 %v4842_v19, %v2695_v41  ;;  %v3780_v41 = vld [vmem:[%s3890_s12 + $0xb8] sm:$0xff] }
 0x3d2   : > { %2877 = vst.msk [vmem:[%s4852_s20 + $0x48] sm:$0xff] %vm348_vm0, %v2845_v26  ;;  %v2815_v12 = vadd.f32 %v3768_v10, %v2701_v40 }
 0x3d3   : > { %2876 = vst.msk [vmem:[%s4852_s20 + $0x40] sm:$0xff] %vm348_vm0, %v2844_v18  ;;  %v2814_v60 = vadd.f32 %v3769_v53, %v2696_v20  ;;  %v3606_v33 = vpop.f32.mrb[62].mxu0  ;;  %v3781_v20 = vld [vmem:[%s3890_s12 + $0xb0] sm:$0xff] }
 0x3d4   : > { %v2847_v50 = vmax.f32 %v2815_v12, 0.0  ;;  %v2711_v54 = vadd.f32 %v3606_v33, %v4842_v19  ;;  %v2705_v4 = vpop.f32.mrb[63].mxu0 }
 0x3d5   : > { %v2846_v3 = vmax.f32 %v2814_v60, 0.0  ;;  %v2706_v22 = vadd.f32 %v4842_v19, %v2705_v4  ;;  %v3782_v4 = vld [vmem:[%s3890_s12 + $0xc8] sm:$0xff] }
 0x3d6   : > { %2879 = vst.msk [vmem:[%s4852_s20 + $0x58] sm:$0xff] %vm348_vm0, %v2847_v50  ;;  %v2817_v32 = vadd.f32 %v3770_v31, %v2711_v54 }
 0x3d7   : > { %2878 = vst.msk [vmem:[%s4852_s20 + $0x50] sm:$0xff] %vm348_vm0, %v2846_v3  ;;  %v2816_v42 = vadd.f32 %v3771_v5, %v2706_v22  ;;  %v3609_v52 = vpop.f32.mrb[64].mxu0  ;;  %v3783_v22 = vld [vmem:[%s3890_s12 + $0xc0] sm:$0xff] }
 0x3d8   : > { %v2849_v56 = vmax.f32 %v2817_v32, 0.0  ;;  %v2721_v24 = vadd.f32 %v3609_v52, %v4842_v19  ;;  %v2715_v6 = vpop.f32.mrb[65].mxu0 }
 0x3d9   : > { %v2848_v1 = vmax.f32 %v2816_v42, 0.0  ;;  %v2716_v58 = vadd.f32 %v4842_v19, %v2715_v6  ;;  %v3784_v6 = vld [vmem:[%s3890_s12 + $0xd8] sm:$0xff] }
 0x3da   : > { %2881 = vst.msk [vmem:[%s4852_s20 + $0x68] sm:$0xff] %vm348_vm0, %v2849_v56  ;;  %v2819_v59 = vadd.f32 %v3772_v61, %v2721_v24 }
 0x3db   : > { %2880 = vst.msk [vmem:[%s4852_s20 + $0x60] sm:$0xff] %vm348_vm0, %v2848_v1  ;;  %v2818_v17 = vadd.f32 %v3773_v43, %v2716_v58  ;;  %v3612_v46 = vpop.f32.mrb[66].mxu0  ;;  %v3785_v58 = vld [vmem:[%s3890_s12 + $0xd0] sm:$0xff] }
 0x3dc   : > { %v2851_v15 = vmax.f32 %v2819_v59, 0.0  ;;  %v2731_v13 = vadd.f32 %v3612_v46, %v4842_v19  ;;  %v2725_v57 = vpop.f32.mrb[67].mxu0 }
 0x3dd   : > { %v2850_v7 = vmax.f32 %v2818_v17, 0.0  ;;  %v2726_v36 = vadd.f32 %v4842_v19, %v2725_v57  ;;  %v3786_v57 = vld [vmem:[%s3890_s12 + $0xe8] sm:$0xff] }
 0x3de   : > { %2883 = vst.msk [vmem:[%s4852_s20 + $0x78] sm:$0xff] %vm348_vm0, %v2851_v15  ;;  %v2821_v16 = vadd.f32 %v3774_v8, %v2731_v13 }
 0x3df   : > { %2882 = vst.msk [vmem:[%s4852_s20 + $0x70] sm:$0xff] %vm348_vm0, %v2850_v7  ;;  %v2820_v2 = vadd.f32 %v3775_v63, %v2726_v36  ;;  %v3615_v48 = vpop.f32.mrb[68].mxu0  ;;  %v3787_v36 = vld [vmem:[%s3890_s12 + $0xe0] sm:$0xff] }
 0x3e0   : > { %v2853_v11 = vmax.f32 %v2821_v16, 0.0  ;;  %v2741_v21 = vadd.f32 %v3615_v48, %v4842_v19  ;;  %v2735_v25 = vpop.f32.mrb[69].mxu0 }
 0x3e1   : > { %v2852_v27 = vmax.f32 %v2820_v2, 0.0  ;;  %v2736_v29 = vadd.f32 %v4842_v19, %v2735_v25  ;;  %v3788_v25 = vld [vmem:[%s3890_s12 + $0xf8] sm:$0xff] }
 0x3e2   : > { %2885 = vst.msk [vmem:[%s4852_s20 + $0x88] sm:$0xff] %vm348_vm0, %v2853_v11  ;;  %v2823_v23 = vadd.f32 %v3776_v30, %v2741_v21 }
 0x3e3   : > { %2884 = vst.msk [vmem:[%s4852_s20 + $0x80] sm:$0xff] %vm348_vm0, %v2852_v27  ;;  %v2822_v34 = vadd.f32 %v3777_v28, %v2736_v29  ;;  %v3618_v35 = vpop.f32.mrb[70].mxu0  ;;  %v3789_v29 = vld [vmem:[%s3890_s12 + $0xf0] sm:$0xff] }
 0x3e4   : > { %v2855_v45 = vmax.f32 %v2823_v23, 0.0  ;;  %v2751_v47 = vadd.f32 %v3618_v35, %v4842_v19  ;;  %v2745_v14 = vpop.f32.mrb[71].mxu0 }
 0x3e5   : > { %v2854_v44 = vmax.f32 %v2822_v34, 0.0  ;;  %v2746_v38 = vadd.f32 %v4842_v19, %v2745_v14 }
 0x3e6   : > { %2887 = vst.msk [vmem:[%s4852_s20 + $0x98] sm:$0xff] %vm348_vm0, %v2855_v45  ;;  %v2825_v51 = vadd.f32 %v3778_v49, %v2751_v47 }
 0x3e7   : > { %2886 = vst.msk [vmem:[%s4852_s20 + $0x90] sm:$0xff] %vm348_vm0, %v2854_v44  ;;  %v2824_v62 = vadd.f32 %v3779_v55, %v2746_v38  ;;  %v3621_v0 = vpop.f32.mrb[72].mxu0 }
 0x3e8   : > { %v2857_v37 = vmax.f32 %v2825_v51, 0.0  ;;  %v2761_v39 = vadd.f32 %v3621_v0, %v4842_v19  ;;  %v2755_v9 = vpop.f32.mrb[73].mxu0 }
 0x3e9   : > { %v2856_v26 = vmax.f32 %v2824_v62, 0.0  ;;  %v2756_v40 = vadd.f32 %v4842_v19, %v2755_v9 }
 0x3ea   : > { %2889 = vst.msk [vmem:[%s4852_s20 + $0xa8] sm:$0xff] %vm348_vm0, %v2857_v37  ;;  %v2827_v18 = vadd.f32 %v3780_v41, %v2761_v39 }
 0x3eb   : > { %2888 = vst.msk [vmem:[%s4852_s20 + $0xa0] sm:$0xff] %vm348_vm0, %v2856_v26  ;;  %v2826_v10 = vadd.f32 %v3781_v20, %v2756_v40  ;;  %v3624_v12 = vpop.f32.mrb[74].mxu0 }
 0x3ec   : > { %v2859_v53 = vmax.f32 %v2827_v18, 0.0  ;;  %v2771_v60 = vadd.f32 %v3624_v12, %v4842_v19  ;;  %v2765_v33 = vpop.f32.mrb[75].mxu0 }
 0x3ed   : > { %v2858_v50 = vmax.f32 %v2826_v10, 0.0  ;;  %v2766_v54 = vadd.f32 %v4842_v19, %v2765_v33 }
 0x3ee   : > { %2891 = vst.msk [vmem:[%s4852_s20 + $0xb8] sm:$0xff] %vm348_vm0, %v2859_v53  ;;  %v2829_v3 = vadd.f32 %v3782_v4, %v2771_v60 }
 0x3ef   : > { %2890 = vst.msk [vmem:[%s4852_s20 + $0xb0] sm:$0xff] %vm348_vm0, %v2858_v50  ;;  %v2828_v31 = vadd.f32 %v3783_v22, %v2766_v54  ;;  %v3627_v32 = vpop.f32.mrb[76].mxu0 }
 0x3f0   : > { %v2861_v5 = vmax.f32 %v2829_v3, 0.0  ;;  %v2781_v42 = vadd.f32 %v3627_v32, %v4842_v19  ;;  %v2775_v52 = vpop.f32.mrb[77].mxu0 }
 0x3f1   : > { %v2860_v56 = vmax.f32 %v2828_v31, 0.0  ;;  %v2776_v24 = vadd.f32 %v4842_v19, %v2775_v52 }
 0x3f2   : > { %2893 = vst.msk [vmem:[%s4852_s20 + $0xc8] sm:$0xff] %vm348_vm0, %v2861_v5  ;;  %v2831_v1 = vadd.f32 %v3784_v6, %v2781_v42 }
 0x3f3   : > { %2892 = vst.msk [vmem:[%s4852_s20 + $0xc0] sm:$0xff] %vm348_vm0, %v2860_v56  ;;  %v2830_v61 = vadd.f32 %v3785_v58, %v2776_v24  ;;  %v3630_v59 = vpop.f32.mrb[78].mxu0 }
 0x3f4   : > { %v2863_v43 = vmax.f32 %v2831_v1, 0.0  ;;  %v2791_v17 = vadd.f32 %v3630_v59, %v4842_v19  ;;  %v2785_v46 = vpop.f32.mrb[79].mxu0 }
 0x3f5   : > { %v2862_v15 = vmax.f32 %v2830_v61, 0.0  ;;  %v2786_v13 = vadd.f32 %v4842_v19, %v2785_v46 }
 0x3f6   : > { %2895 = vst.msk [vmem:[%s4852_s20 + $0xd8] sm:$0xff] %vm348_vm0, %v2863_v43  ;;  %v2833_v7 = vadd.f32 %v3786_v57, %v2791_v17 }
 0x3f7   : > { %2894 = vst.msk [vmem:[%s4852_s20 + $0xd0] sm:$0xff] %vm348_vm0, %v2862_v15  ;;  %v2832_v8 = vadd.f32 %v3787_v36, %v2786_v13  ;;  %v3633_v16 = vpop.f32.mrb[80].mxu0 }
 0x3f8   : > { %v2865_v63 = vmax.f32 %v2833_v7, 0.0  ;;  %v2801_v2 = vadd.f32 %v3633_v16, %v4842_v19  ;;  %v2795_v48 = vpop.f32.mrb[81].mxu0 }
 0x3f9   : > { %v2864_v11 = vmax.f32 %v2832_v8, 0.0  ;;  %v2796_v21 = vadd.f32 %v4842_v19, %v2795_v48 }
 0x3fa   : > { %2897 = vst.msk [vmem:[%s4852_s20 + $0xe8] sm:$0xff] %vm348_vm0, %v2865_v63  ;;  %v2835_v27 = vadd.f32 %v3788_v25, %v2801_v2 }
 0x3fb   : > { %2896 = vst.msk [vmem:[%s4852_s20 + $0xe0] sm:$0xff] %vm348_vm0, %v2864_v11  ;;  %v2834_v30 = vadd.f32 %v3789_v29, %v2796_v21 }
 0x3fc   : > { %v2867_v23 = vmax.f32 %v2835_v27, 0.0 }
 0x3fd   : > { %v2866_v28 = vmax.f32 %v2834_v30, 0.0 }
 0x3fe   : > { %2899 = vst.msk [vmem:[%s4852_s20 + $0xf8] sm:$0xff] %vm348_vm0, %v2867_v23 }
 0x3ff   : > { %2898 = vst.msk [vmem:[%s4852_s20 + $0xf0] sm:$0xff] %vm348_vm0, %v2866_v28 }
 0x400 PF: > { %s17_s26 = sadd.s32 1, %s3812_s26   ;;  %s4998_s24 = smov %s3808_s25 }
 0x401   : > { %p14_p5 = scmp.ge.s32.totalorder %s17_s26, 4   ;;  %s4999_s25 = smov %s5001_s27 }
 0x403   :  { %16 = sbr.rel (!%p14_p5) target bundleno = 2 (0x2), region = 85 }

</bundles_post_ra>
